<compile_context>
chip_gen: v5e
topology: v5e:2x2
jax: 0.10.0
libtpu: 0.0.40
codegen_flags: <defaults>
</compile_context>

<pallas_src>
import math

import jax
import jax.numpy as jnp
from jax import lax
from jax.experimental import pallas as pl
from jax.experimental.pallas import tpu as pltpu  # noqa: F401  (kept for scale-up knobs)


# ----------------------------- configuration (small, BERT-like) ----------------
B = 2            # batch
S = 8            # sequence length
H = 32           # hidden size         (768 in the real model)
NH = 4           # attention heads     (12 in the real model)
DH = H // NH     # head dim
INTER = 64       # FFN intermediate    (3072 in the real model)
N_LAYERS = 2     # encoder layers      (12 in the real model)
N_CLASSES = 8    # fc output (matches nn.Linear(768, 8))
VOCAB = 100
MAX_POS = 32
LN_EPS = 1e-12   # BERT layer-norm epsilon
M = B * S        # total rows

MXU_DTYPE = jnp.bfloat16   # MXU operand dtype (accumulation stays float32)


# ----------------------------- in-kernel helpers --------------------------------
def _mm(a, b):
    """MXU matmul, f32 accumulate. astype on an already-bf16 weight is a
    trace-time no-op, so bf16-resident weights are not re-cast."""
    return jnp.dot(a.astype(MXU_DTYPE), b.astype(MXU_DTYPE),
                   preferred_element_type=jnp.float32)


def _qk_scores(qh, kh):
    """q @ k^T without materializing k^T: contract dim 1 of both operands."""
    return lax.dot_general(qh.astype(MXU_DTYPE), kh.astype(MXU_DTYPE),
                           dimension_numbers=(((1,), (1,)), ((), ())),
                           preferred_element_type=jnp.float32)


def _layernorm(x, g, b):
    mu = jnp.mean(x, axis=-1, keepdims=True)
    d = x - mu
    var = jnp.mean(d * d, axis=-1, keepdims=True)
    return d * lax.rsqrt(var + LN_EPS) * g + b


def _gelu(x):
    # TODO(synk): HF BERT uses exact erf-GELU; tanh approximation kept here
    # (same EUP slot so perf is identical; numerics differ slightly).
    return 0.5 * x * (1.0 + jnp.tanh(0.7978845608028654 * (x + 0.044715 * x * x * x)))


# ----------------------------- fused whole-model kernel -------------------------
def _bert_fused_kernel(emb_ref, mask_ref,
                       emb_g_ref, emb_b_ref,
                       wqkv_ref, bqkv_ref, wo_ref, bo_ref,
                       ln1_g_ref, ln1_b_ref,
                       w1_ref, b1_ref, w2_ref, b2_ref,
                       ln2_g_ref, ln2_b_ref,
                       fc_w_ref, fc_b_ref,
                       logits_ref, probs_ref):
    """Whole BertClassifier forward for all B*S rows in one invocation."""
    mask = mask_ref[...]                                   # (M, M) block-diag batch mask, f32

    # ---- embedding layernorm ----
    h = _layernorm(emb_ref[...], emb_g_ref[...], emb_b_ref[...])     # (M, H) f32

    plist = []                                             # per-(layer, head) probs, vreg-resident
    for l in range(N_LAYERS):                              # static unroll
        # ---- fused QKV projection (Q columns pre-scaled by 1/sqrt(DH) at init) ----
        qkv = _mm(h, wqkv_ref[l]) + bqkv_ref[l]            # (M, 3H)
        q = qkv[:, 0:H]
        k = qkv[:, H:2 * H]
        v = qkv[:, 2 * H:3 * H]

        # ---- per-head attention on the full row block; batch isolation via mask ----
        ctx_list = []
        for hd in range(NH):
            lo, hi = hd * DH, (hd + 1) * DH
            scores = _qk_scores(q[:, lo:hi], k[:, lo:hi])  # (M, M) f32
            mx = jnp.max(scores, axis=-1, keepdims=True)
            e = jnp.exp(scores - mx) * mask                # cross-batch entries -> 0
            p = e * pl.reciprocal(jnp.sum(e, axis=-1, keepdims=True), approx=True)
            plist.append(p)
            ctx_list.append(_mm(p, v[:, lo:hi]))           # (M, DH)
        ctx = jnp.concatenate(ctx_list, axis=-1)           # (M, H), stays in vregs

        # ---- attention output projection + residual + LN1 ----
        h1 = _layernorm(_mm(ctx, wo_ref[l]) + bo_ref[l] + h,
                        ln1_g_ref[l], ln1_b_ref[l])

        # ---- feed forward (GELU) + residual + LN2 ----
        inter = _gelu(_mm(h1, w1_ref[l]) + b1_ref[l])
        h = _layernorm(_mm(inter, w2_ref[l]) + b2_ref[l] + h1,
                       ln2_g_ref[l], ln2_b_ref[l])

    # ---- classifier head on the CLS rows (row b*S of each batch element) ----
    cls = jnp.concatenate([h[b * S:b * S + 1, :] for b in range(B)], axis=0)   # (B, H)
    logits_ref[...] = _mm(cls, fc_w_ref[...]) + fc_b_ref[...]

    # ---- single lane-dense (M, L*NH*M) = (16, 128) store of all attention probs ----
    probs_ref[...] = jnp.concatenate(plist, axis=-1)


# ----------------------------- parameter init (deterministic, synthetic) -------
class _KeyGen:
    def __init__(self, key):
        self._key = key

    def __call__(self):
        self._key, k = jax.random.split(self._key)
        return k


def init_params(seed=0):
    kg = _KeyGen(jax.random.PRNGKey(seed))
    std = 0.02

    def w(shape):
        return (std * jax.random.normal(kg(), shape)).astype(jnp.float32)

    q_scale = 1.0 / math.sqrt(DH)

    wqkv, bqkv, wo, bo = [], [], [], []
    ln1_g, ln1_b, w1, b1, w2, b2, ln2_g, ln2_b = [], [], [], [], [], [], [], []
    for _ in range(N_LAYERS):
        wq = w((H, 3 * H))
        # pre-scale the Q output columns by 1/sqrt(DH): equivalent to scaling scores
        wq = wq.at[:, :H].multiply(q_scale)
        bq = jnp.zeros((1, 3 * H), jnp.float32).at[:, :H].multiply(q_scale)
        wqkv.append(wq)
        bqkv.append(bq)
        wo.append(w((H, H)))
        bo.append(jnp.zeros((1, H), jnp.float32))
        ln1_g.append(jnp.ones((1, H), jnp.float32))
        ln1_b.append(jnp.zeros((1, H), jnp.float32))
        w1.append(w((H, INTER)))
        b1.append(jnp.zeros((1, INTER), jnp.float32))
        w2.append(w((INTER, H)))
        b2.append(jnp.zeros((1, H), jnp.float32))
        ln2_g.append(jnp.ones((1, H), jnp.float32))
        ln2_b.append(jnp.zeros((1, H), jnp.float32))

    return {
        "word_emb": w((VOCAB, H)),
        "pos_emb": w((MAX_POS, H)),
        "type_emb": w((2, H)),
        "emb_ln_g": jnp.ones((1, H), jnp.float32),
        "emb_ln_b": jnp.zeros((1, H), jnp.float32),
        # matmul weights resident in bf16 (f32 accumulation at the dot)
        "wqkv": jnp.stack(wqkv).astype(MXU_DTYPE),   # (L, H, 3H)
        "bqkv": jnp.stack(bqkv),                     # (L, 1, 3H) f32
        "wo": jnp.stack(wo).astype(MXU_DTYPE),       # (L, H, H)
        "bo": jnp.stack(bo),
        "ln1_g": jnp.stack(ln1_g), "ln1_b": jnp.stack(ln1_b),
        "w1": jnp.stack(w1).astype(MXU_DTYPE),       # (L, H, INTER)
        "b1": jnp.stack(b1),
        "w2": jnp.stack(w2).astype(MXU_DTYPE),       # (L, INTER, H)
        "b2": jnp.stack(b2),
        "ln2_g": jnp.stack(ln2_g), "ln2_b": jnp.stack(ln2_b),
        "fc_w": w((H, N_CLASSES)).astype(MXU_DTYPE),
        "fc_b": jnp.zeros((1, N_CLASSES), jnp.float32),
    }


# ----------------------------- forward pass (BertClassifier.forward) -----------
@jax.jit
def bert_classifier_forward(params, x_ids):
    """Mirrors:  h = fc(bert(x)[0][:, 0, :]);  return (h, attentions)."""
    Bb, Ss = x_ids.shape

    # --- embeddings (gather + adds are plain-JAX glue) ---
    we = params["word_emb"][x_ids]                        # (B, S, H)
    pe = params["pos_emb"][:Ss]                           # (S, H)
    te = params["type_emb"][0]                            # (H,)  token_type_ids == 0
    emb = (we + pe[None, :, :] + te[None, None, :]).reshape(Bb * Ss, H)

    # block-diagonal batch-isolation mask (constant-folded under jit)
    rows = jnp.arange(Bb * Ss) // Ss
    mask = (rows[:, None] == rows[None, :]).astype(jnp.float32)

    # --- single fused Pallas kernel: emb LN -> all layers -> CLS -> fc ---
    logits, probs_flat = pl.pallas_call(
        _bert_fused_kernel,
        out_shape=(
            jax.ShapeDtypeStruct((Bb, N_CLASSES), jnp.float32),
            jax.ShapeDtypeStruct((Bb * Ss, N_LAYERS * NH * Bb * Ss), jnp.float32),
        ),
    )(emb, mask,
      params["emb_ln_g"], params["emb_ln_b"],
      params["wqkv"], params["bqkv"], params["wo"], params["bo"],
      params["ln1_g"], params["ln1_b"],
      params["w1"], params["b1"], params["w2"], params["b2"],
      params["ln2_g"], params["ln2_b"],
      params["fc_w"], params["fc_b"])

    # --- unpack the lane-dense probs slab -> per-layer (B, NH, S, S) ---
    pf = probs_flat.reshape(Bb, Ss, N_LAYERS, NH, Bb, Ss)
    sel = pf[jnp.arange(Bb), :, :, :, jnp.arange(Bb), :]          # (B, S, L, NH, S)
    attn_all = jnp.transpose(sel, (2, 0, 3, 1, 4))                # (L, B, NH, S, S)
    attentions = tuple(attn_all[l] for l in range(N_LAYERS))
    return logits, attentions                                     # (h, bert_out[2])


# ----------------------------- main ---------------------------------------------
if __name__ == "__main__":
    params = init_params(seed=0)
    key = jax.random.PRNGKey(0)
    x = jax.random.randint(key, (B, S), 0, VOCAB, dtype=jnp.int32)   # token ids

    logits, attns = bert_classifier_forward(params, x)
    jax.block_until_ready(logits)
    jax.block_until_ready(attns)

    assert logits.shape == (B, N_CLASSES)
    assert len(attns) == N_LAYERS and attns[0].shape == (B, NH, S, S)
    assert bool(jnp.all(jnp.isfinite(logits)))
    # softmax rows must sum to 1; tolerance relaxed for pl.reciprocal(approx=True)
    assert bool(jnp.allclose(jnp.sum(attns[0], axis=-1), 1.0, atol=2e-3))
    assert bool(jnp.allclose(jnp.sum(attns[-1], axis=-1), 1.0, atol=2e-3))
    print("KERNEL_OK")
</pallas_src>

<mosaic_0001>
module attributes {stable_mosaic.version = 11 : i64} {
  func.func @_bert_fused_kernel(%arg0: memref<16x32xf32, #tpu.memory_space<vmem>>, %arg1: memref<16x16xf32, #tpu.memory_space<vmem>>, %arg2: memref<1x32xf32, #tpu.memory_space<vmem>>, %arg3: memref<1x32xf32, #tpu.memory_space<vmem>>, %arg4: memref<2x32x96xbf16, #tpu.memory_space<vmem>>, %arg5: memref<2x1x96xf32, #tpu.memory_space<vmem>>, %arg6: memref<2x32x32xbf16, #tpu.memory_space<vmem>>, %arg7: memref<2x1x32xf32, #tpu.memory_space<vmem>>, %arg8: memref<2x1x32xf32, #tpu.memory_space<vmem>>, %arg9: memref<2x1x32xf32, #tpu.memory_space<vmem>>, %arg10: memref<2x32x64xbf16, #tpu.memory_space<vmem>>, %arg11: memref<2x1x64xf32, #tpu.memory_space<vmem>>, %arg12: memref<2x64x32xbf16, #tpu.memory_space<vmem>>, %arg13: memref<2x1x32xf32, #tpu.memory_space<vmem>>, %arg14: memref<2x1x32xf32, #tpu.memory_space<vmem>>, %arg15: memref<2x1x32xf32, #tpu.memory_space<vmem>>, %arg16: memref<32x8xbf16, #tpu.memory_space<vmem>>, %arg17: memref<1x8xf32, #tpu.memory_space<vmem>>, %arg18: memref<2x8xf32, #tpu.memory_space<vmem>>, %arg19: memref<16x128xf32, #tpu.memory_space<vmem>>) attributes {dimension_semantics = [], scalar_prefetch = 0 : i64, scratch_operands = 0 : i64, tpu.core_type = #tpu.core_type<tc>} {
    %c0 = arith.constant 0 : index
    %c0_0 = arith.constant 0 : index
    %0 = vector.load %arg1[%c0, %c0_0] : memref<16x16xf32, #tpu.memory_space<vmem>>, vector<16x16xf32>
    %c0_1 = arith.constant 0 : index
    %c0_2 = arith.constant 0 : index
    %1 = vector.load %arg0[%c0_1, %c0_2] : memref<16x32xf32, #tpu.memory_space<vmem>>, vector<16x32xf32>
    %c0_3 = arith.constant 0 : index
    %c0_4 = arith.constant 0 : index
    %2 = vector.load %arg2[%c0_3, %c0_4] : memref<1x32xf32, #tpu.memory_space<vmem>>, vector<1x32xf32>
    %c0_5 = arith.constant 0 : index
    %c0_6 = arith.constant 0 : index
    %3 = vector.load %arg3[%c0_5, %c0_6] : memref<1x32xf32, #tpu.memory_space<vmem>>, vector<1x32xf32>
    %cst = arith.constant dense<0.000000e+00> : vector<16xf32>
    %4 = vector.multi_reduction <add>, %1, %cst [1] : vector<16x32xf32> to vector<16xf32>
    %5 = vector.shape_cast %4 : vector<16xf32> to vector<16x1xf32>
    %cst_7 = arith.constant 3.200000e+01 : f32
    %6 = vector.broadcast %cst_7 : f32 to vector<16x1xf32>
    %7 = arith.divf %5, %6 : vector<16x1xf32>
    %8 = vector.broadcast %7 : vector<16x1xf32> to vector<16x32xf32>
    %9 = arith.subf %1, %8 : vector<16x32xf32>
    %10 = arith.mulf %9, %9 : vector<16x32xf32>
    %cst_8 = arith.constant dense<0.000000e+00> : vector<16xf32>
    %11 = vector.multi_reduction <add>, %10, %cst_8 [1] : vector<16x32xf32> to vector<16xf32>
    %12 = vector.shape_cast %11 : vector<16xf32> to vector<16x1xf32>
    %cst_9 = arith.constant 3.200000e+01 : f32
    %13 = vector.broadcast %cst_9 : f32 to vector<16x1xf32>
    %14 = arith.divf %12, %13 : vector<16x1xf32>
    %cst_10 = arith.constant 9.99999996E-13 : f32
    %15 = vector.broadcast %cst_10 : f32 to vector<16x1xf32>
    %16 = arith.addf %14, %15 : vector<16x1xf32>
    %17 = math.rsqrt %16 : vector<16x1xf32>
    %18 = vector.broadcast %17 : vector<16x1xf32> to vector<16x32xf32>
    %19 = arith.mulf %9, %18 : vector<16x32xf32>
    %20 = vector.broadcast %2 : vector<1x32xf32> to vector<16x32xf32>
    %21 = arith.mulf %19, %20 : vector<16x32xf32>
    %22 = vector.broadcast %3 : vector<1x32xf32> to vector<16x32xf32>
    %23 = arith.addf %21, %22 : vector<16x32xf32>
    %c0_11 = arith.constant 0 : index
    %c0_12 = arith.constant 0 : index
    %c0_13 = arith.constant 0 : index
    %24 = vector.load %arg4[%c0_11, %c0_12, %c0_13] : memref<2x32x96xbf16, #tpu.memory_space<vmem>>, vector<1x32x96xbf16>
    %25 = vector.shape_cast %24 : vector<1x32x96xbf16> to vector<32x96xbf16>
    %26 = arith.truncf %23 : vector<16x32xf32> to vector<16x32xbf16>
    %cst_14 = arith.constant dense<0.000000e+00> : vector<16x96xf32>
    %27 = tpu.matmul %26, %25, %cst_14 {dimension_numbers = #tpu.dot_dimension_numbers<[1], [0], [0], [1], [0, 0, 1, 1], [], []>} : vector<16x32xbf16>, vector<32x96xbf16>, vector<16x96xf32> -> vector<16x96xf32>
    %c0_15 = arith.constant 0 : index
    %c0_16 = arith.constant 0 : index
    %c0_17 = arith.constant 0 : index
    %28 = vector.load %arg5[%c0_15, %c0_16, %c0_17] : memref<2x1x96xf32, #tpu.memory_space<vmem>>, vector<1x1x96xf32>
    %29 = vector.shape_cast %28 : vector<1x1x96xf32> to vector<1x96xf32>
    %30 = vector.broadcast %29 : vector<1x96xf32> to vector<16x96xf32>
    %31 = arith.addf %27, %30 : vector<16x96xf32>
    %32 = vector.extract_strided_slice %31 {offsets = [0, 0], sizes = [16, 32], strides = [1, 1]} : vector<16x96xf32> to vector<16x32xf32>
    %33 = vector.extract_strided_slice %31 {offsets = [0, 32], sizes = [16, 32], strides = [1, 1]} : vector<16x96xf32> to vector<16x32xf32>
    %34 = vector.extract_strided_slice %31 {offsets = [0, 64], sizes = [16, 32], strides = [1, 1]} : vector<16x96xf32> to vector<16x32xf32>
    %35 = vector.extract_strided_slice %32 {offsets = [0, 0], sizes = [16, 8], strides = [1, 1]} : vector<16x32xf32> to vector<16x8xf32>
    %36 = vector.extract_strided_slice %33 {offsets = [0, 0], sizes = [16, 8], strides = [1, 1]} : vector<16x32xf32> to vector<16x8xf32>
    %37 = arith.truncf %35 : vector<16x8xf32> to vector<16x8xbf16>
    %38 = arith.truncf %36 : vector<16x8xf32> to vector<16x8xbf16>
    %cst_18 = arith.constant dense<0.000000e+00> : vector<16x16xf32>
    %39 = tpu.matmul %37, %38, %cst_18 {dimension_numbers = #tpu.dot_dimension_numbers<[1], [1], [0], [0], [0, 0, 1, 0], [], []>} : vector<16x8xbf16>, vector<16x8xbf16>, vector<16x16xf32> -> vector<16x16xf32>
    %cst_19 = arith.constant dense<0xFF800000> : vector<16xf32>
    %40 = vector.multi_reduction <maximumf>, %39, %cst_19 [1] : vector<16x16xf32> to vector<16xf32>
    %41 = vector.shape_cast %40 : vector<16xf32> to vector<16x1xf32>
    %42 = vector.broadcast %41 : vector<16x1xf32> to vector<16x16xf32>
    %43 = arith.subf %39, %42 : vector<16x16xf32>
    %44 = math.exp %43 : vector<16x16xf32>
    %45 = arith.mulf %44, %0 : vector<16x16xf32>
    %cst_20 = arith.constant dense<0.000000e+00> : vector<16xf32>
    %46 = vector.multi_reduction <add>, %45, %cst_20 [1] : vector<16x16xf32> to vector<16xf32>
    %47 = vector.shape_cast %46 : vector<16xf32> to vector<16x1xf32>
    %48 = tpu.reciprocal %47 {approx = true} : vector<16x1xf32> -> vector<16x1xf32>
    %49 = vector.broadcast %48 : vector<16x1xf32> to vector<16x16xf32>
    %50 = arith.mulf %45, %49 : vector<16x16xf32>
    %51 = vector.extract_strided_slice %34 {offsets = [0, 0], sizes = [16, 8], strides = [1, 1]} : vector<16x32xf32> to vector<16x8xf32>
    %52 = arith.truncf %50 : vector<16x16xf32> to vector<16x16xbf16>
    %53 = arith.truncf %51 : vector<16x8xf32> to vector<16x8xbf16>
    %cst_21 = arith.constant dense<0.000000e+00> : vector<16x8xf32>
    %54 = tpu.matmul %52, %53, %cst_21 {dimension_numbers = #tpu.dot_dimension_numbers<[1], [0], [0], [1], [0, 0, 1, 1], [], []>} : vector<16x16xbf16>, vector<16x8xbf16>, vector<16x8xf32> -> vector<16x8xf32>
    %55 = vector.extract_strided_slice %32 {offsets = [0, 8], sizes = [16, 8], strides = [1, 1]} : vector<16x32xf32> to vector<16x8xf32>
    %56 = vector.extract_strided_slice %33 {offsets = [0, 8], sizes = [16, 8], strides = [1, 1]} : vector<16x32xf32> to vector<16x8xf32>
    %57 = arith.truncf %55 : vector<16x8xf32> to vector<16x8xbf16>
    %58 = arith.truncf %56 : vector<16x8xf32> to vector<16x8xbf16>
    %cst_22 = arith.constant dense<0.000000e+00> : vector<16x16xf32>
    %59 = tpu.matmul %57, %58, %cst_22 {dimension_numbers = #tpu.dot_dimension_numbers<[1], [1], [0], [0], [0, 0, 1, 0], [], []>} : vector<16x8xbf16>, vector<16x8xbf16>, vector<16x16xf32> -> vector<16x16xf32>
    %cst_23 = arith.constant dense<0xFF800000> : vector<16xf32>
    %60 = vector.multi_reduction <maximumf>, %59, %cst_23 [1] : vector<16x16xf32> to vector<16xf32>
    %61 = vector.shape_cast %60 : vector<16xf32> to vector<16x1xf32>
    %62 = vector.broadcast %61 : vector<16x1xf32> to vector<16x16xf32>
    %63 = arith.subf %59, %62 : vector<16x16xf32>
    %64 = math.exp %63 : vector<16x16xf32>
    %65 = arith.mulf %64, %0 : vector<16x16xf32>
    %cst_24 = arith.constant dense<0.000000e+00> : vector<16xf32>
    %66 = vector.multi_reduction <add>, %65, %cst_24 [1] : vector<16x16xf32> to vector<16xf32>
    %67 = vector.shape_cast %66 : vector<16xf32> to vector<16x1xf32>
    %68 = tpu.reciprocal %67 {approx = true} : vector<16x1xf32> -> vector<16x1xf32>
    %69 = vector.broadcast %68 : vector<16x1xf32> to vector<16x16xf32>
    %70 = arith.mulf %65, %69 : vector<16x16xf32>
    %71 = vector.extract_strided_slice %34 {offsets = [0, 8], sizes = [16, 8], strides = [1, 1]} : vector<16x32xf32> to vector<16x8xf32>
    %72 = arith.truncf %70 : vector<16x16xf32> to vector<16x16xbf16>
    %73 = arith.truncf %71 : vector<16x8xf32> to vector<16x8xbf16>
    %cst_25 = arith.constant dense<0.000000e+00> : vector<16x8xf32>
    %74 = tpu.matmul %72, %73, %cst_25 {dimension_numbers = #tpu.dot_dimension_numbers<[1], [0], [0], [1], [0, 0, 1, 1], [], []>} : vector<16x16xbf16>, vector<16x8xbf16>, vector<16x8xf32> -> vector<16x8xf32>
    %75 = vector.extract_strided_slice %32 {offsets = [0, 16], sizes = [16, 8], strides = [1, 1]} : vector<16x32xf32> to vector<16x8xf32>
    %76 = vector.extract_strided_slice %33 {offsets = [0, 16], sizes = [16, 8], strides = [1, 1]} : vector<16x32xf32> to vector<16x8xf32>
    %77 = arith.truncf %75 : vector<16x8xf32> to vector<16x8xbf16>
    %78 = arith.truncf %76 : vector<16x8xf32> to vector<16x8xbf16>
    %cst_26 = arith.constant dense<0.000000e+00> : vector<16x16xf32>
    %79 = tpu.matmul %77, %78, %cst_26 {dimension_numbers = #tpu.dot_dimension_numbers<[1], [1], [0], [0], [0, 0, 1, 0], [], []>} : vector<16x8xbf16>, vector<16x8xbf16>, vector<16x16xf32> -> vector<16x16xf32>
    %cst_27 = arith.constant dense<0xFF800000> : vector<16xf32>
    %80 = vector.multi_reduction <maximumf>, %79, %cst_27 [1] : vector<16x16xf32> to vector<16xf32>
    %81 = vector.shape_cast %80 : vector<16xf32> to vector<16x1xf32>
    %82 = vector.broadcast %81 : vector<16x1xf32> to vector<16x16xf32>
    %83 = arith.subf %79, %82 : vector<16x16xf32>
    %84 = math.exp %83 : vector<16x16xf32>
    %85 = arith.mulf %84, %0 : vector<16x16xf32>
    %cst_28 = arith.constant dense<0.000000e+00> : vector<16xf32>
    %86 = vector.multi_reduction <add>, %85, %cst_28 [1] : vector<16x16xf32> to vector<16xf32>
    %87 = vector.shape_cast %86 : vector<16xf32> to vector<16x1xf32>
    %88 = tpu.reciprocal %87 {approx = true} : vector<16x1xf32> -> vector<16x1xf32>
    %89 = vector.broadcast %88 : vector<16x1xf32> to vector<16x16xf32>
    %90 = arith.mulf %85, %89 : vector<16x16xf32>
    %91 = vector.extract_strided_slice %34 {offsets = [0, 16], sizes = [16, 8], strides = [1, 1]} : vector<16x32xf32> to vector<16x8xf32>
    %92 = arith.truncf %90 : vector<16x16xf32> to vector<16x16xbf16>
    %93 = arith.truncf %91 : vector<16x8xf32> to vector<16x8xbf16>
    %cst_29 = arith.constant dense<0.000000e+00> : vector<16x8xf32>
    %94 = tpu.matmul %92, %93, %cst_29 {dimension_numbers = #tpu.dot_dimension_numbers<[1], [0], [0], [1], [0, 0, 1, 1], [], []>} : vector<16x16xbf16>, vector<16x8xbf16>, vector<16x8xf32> -> vector<16x8xf32>
    %95 = vector.extract_strided_slice %32 {offsets = [0, 24], sizes = [16, 8], strides = [1, 1]} : vector<16x32xf32> to vector<16x8xf32>
    %96 = vector.extract_strided_slice %33 {offsets = [0, 24], sizes = [16, 8], strides = [1, 1]} : vector<16x32xf32> to vector<16x8xf32>
    %97 = arith.truncf %95 : vector<16x8xf32> to vector<16x8xbf16>
    %98 = arith.truncf %96 : vector<16x8xf32> to vector<16x8xbf16>
    %cst_30 = arith.constant dense<0.000000e+00> : vector<16x16xf32>
    %99 = tpu.matmul %97, %98, %cst_30 {dimension_numbers = #tpu.dot_dimension_numbers<[1], [1], [0], [0], [0, 0, 1, 0], [], []>} : vector<16x8xbf16>, vector<16x8xbf16>, vector<16x16xf32> -> vector<16x16xf32>
    %cst_31 = arith.constant dense<0xFF800000> : vector<16xf32>
    %100 = vector.multi_reduction <maximumf>, %99, %cst_31 [1] : vector<16x16xf32> to vector<16xf32>
    %101 = vector.shape_cast %100 : vector<16xf32> to vector<16x1xf32>
    %102 = vector.broadcast %101 : vector<16x1xf32> to vector<16x16xf32>
    %103 = arith.subf %99, %102 : vector<16x16xf32>
    %104 = math.exp %103 : vector<16x16xf32>
    %105 = arith.mulf %104, %0 : vector<16x16xf32>
    %cst_32 = arith.constant dense<0.000000e+00> : vector<16xf32>
    %106 = vector.multi_reduction <add>, %105, %cst_32 [1] : vector<16x16xf32> to vector<16xf32>
    %107 = vector.shape_cast %106 : vector<16xf32> to vector<16x1xf32>
    %108 = tpu.reciprocal %107 {approx = true} : vector<16x1xf32> -> vector<16x1xf32>
    %109 = vector.broadcast %108 : vector<16x1xf32> to vector<16x16xf32>
    %110 = arith.mulf %105, %109 : vector<16x16xf32>
    %111 = vector.extract_strided_slice %34 {offsets = [0, 24], sizes = [16, 8], strides = [1, 1]} : vector<16x32xf32> to vector<16x8xf32>
    %112 = arith.truncf %110 : vector<16x16xf32> to vector<16x16xbf16>
    %113 = arith.truncf %111 : vector<16x8xf32> to vector<16x8xbf16>
    %cst_33 = arith.constant dense<0.000000e+00> : vector<16x8xf32>
    %114 = tpu.matmul %112, %113, %cst_33 {dimension_numbers = #tpu.dot_dimension_numbers<[1], [0], [0], [1], [0, 0, 1, 1], [], []>} : vector<16x16xbf16>, vector<16x8xbf16>, vector<16x8xf32> -> vector<16x8xf32>
    %115 = tpu.concatenate %54, %74, %94, %114 in 1 : vector<16x8xf32>, vector<16x8xf32>, vector<16x8xf32>, vector<16x8xf32> -> vector<16x32xf32>
    %c0_34 = arith.constant 0 : index
    %c0_35 = arith.constant 0 : index
    %c0_36 = arith.constant 0 : index
    %116 = vector.load %arg6[%c0_34, %c0_35, %c0_36] : memref<2x32x32xbf16, #tpu.memory_space<vmem>>, vector<1x32x32xbf16>
    %117 = vector.shape_cast %116 : vector<1x32x32xbf16> to vector<32x32xbf16>
    %118 = arith.truncf %115 : vector<16x32xf32> to vector<16x32xbf16>
    %cst_37 = arith.constant dense<0.000000e+00> : vector<16x32xf32>
    %119 = tpu.matmul %118, %117, %cst_37 {dimension_numbers = #tpu.dot_dimension_numbers<[1], [0], [0], [1], [0, 0, 1, 1], [], []>} : vector<16x32xbf16>, vector<32x32xbf16>, vector<16x32xf32> -> vector<16x32xf32>
    %c0_38 = arith.constant 0 : index
    %c0_39 = arith.constant 0 : index
    %c0_40 = arith.constant 0 : index
    %120 = vector.load %arg7[%c0_38, %c0_39, %c0_40] : memref<2x1x32xf32, #tpu.memory_space<vmem>>, vector<1x1x32xf32>
    %121 = vector.shape_cast %120 : vector<1x1x32xf32> to vector<1x32xf32>
    %122 = vector.broadcast %121 : vector<1x32xf32> to vector<16x32xf32>
    %123 = arith.addf %119, %122 : vector<16x32xf32>
    %124 = arith.addf %123, %23 : vector<16x32xf32>
    %c0_41 = arith.constant 0 : index
    %c0_42 = arith.constant 0 : index
    %c0_43 = arith.constant 0 : index
    %125 = vector.load %arg8[%c0_41, %c0_42, %c0_43] : memref<2x1x32xf32, #tpu.memory_space<vmem>>, vector<1x1x32xf32>
    %126 = vector.shape_cast %125 : vector<1x1x32xf32> to vector<1x32xf32>
    %c0_44 = arith.constant 0 : index
    %c0_45 = arith.constant 0 : index
    %c0_46 = arith.constant 0 : index
    %127 = vector.load %arg9[%c0_44, %c0_45, %c0_46] : memref<2x1x32xf32, #tpu.memory_space<vmem>>, vector<1x1x32xf32>
    %128 = vector.shape_cast %127 : vector<1x1x32xf32> to vector<1x32xf32>
    %cst_47 = arith.constant dense<0.000000e+00> : vector<16xf32>
    %129 = vector.multi_reduction <add>, %124, %cst_47 [1] : vector<16x32xf32> to vector<16xf32>
    %130 = vector.shape_cast %129 : vector<16xf32> to vector<16x1xf32>
    %cst_48 = arith.constant 3.200000e+01 : f32
    %131 = vector.broadcast %cst_48 : f32 to vector<16x1xf32>
    %132 = arith.divf %130, %131 : vector<16x1xf32>
    %133 = vector.broadcast %132 : vector<16x1xf32> to vector<16x32xf32>
    %134 = arith.subf %124, %133 : vector<16x32xf32>
    %135 = arith.mulf %134, %134 : vector<16x32xf32>
    %cst_49 = arith.constant dense<0.000000e+00> : vector<16xf32>
    %136 = vector.multi_reduction <add>, %135, %cst_49 [1] : vector<16x32xf32> to vector<16xf32>
    %137 = vector.shape_cast %136 : vector<16xf32> to vector<16x1xf32>
    %cst_50 = arith.constant 3.200000e+01 : f32
    %138 = vector.broadcast %cst_50 : f32 to vector<16x1xf32>
    %139 = arith.divf %137, %138 : vector<16x1xf32>
    %cst_51 = arith.constant 9.99999996E-13 : f32
    %140 = vector.broadcast %cst_51 : f32 to vector<16x1xf32>
    %141 = arith.addf %139, %140 : vector<16x1xf32>
    %142 = math.rsqrt %141 : vector<16x1xf32>
    %143 = vector.broadcast %142 : vector<16x1xf32> to vector<16x32xf32>
    %144 = arith.mulf %134, %143 : vector<16x32xf32>
    %145 = vector.broadcast %126 : vector<1x32xf32> to vector<16x32xf32>
    %146 = arith.mulf %144, %145 : vector<16x32xf32>
    %147 = vector.broadcast %128 : vector<1x32xf32> to vector<16x32xf32>
    %148 = arith.addf %146, %147 : vector<16x32xf32>
    %c0_52 = arith.constant 0 : index
    %c0_53 = arith.constant 0 : index
    %c0_54 = arith.constant 0 : index
    %149 = vector.load %arg10[%c0_52, %c0_53, %c0_54] : memref<2x32x64xbf16, #tpu.memory_space<vmem>>, vector<1x32x64xbf16>
    %150 = vector.shape_cast %149 : vector<1x32x64xbf16> to vector<32x64xbf16>
    %151 = arith.truncf %148 : vector<16x32xf32> to vector<16x32xbf16>
    %cst_55 = arith.constant dense<0.000000e+00> : vector<16x64xf32>
    %152 = tpu.matmul %151, %150, %cst_55 {dimension_numbers = #tpu.dot_dimension_numbers<[1], [0], [0], [1], [0, 0, 1, 1], [], []>} : vector<16x32xbf16>, vector<32x64xbf16>, vector<16x64xf32> -> vector<16x64xf32>
    %c0_56 = arith.constant 0 : index
    %c0_57 = arith.constant 0 : index
    %c0_58 = arith.constant 0 : index
    %153 = vector.load %arg11[%c0_56, %c0_57, %c0_58] : memref<2x1x64xf32, #tpu.memory_space<vmem>>, vector<1x1x64xf32>
    %154 = vector.shape_cast %153 : vector<1x1x64xf32> to vector<1x64xf32>
    %155 = vector.broadcast %154 : vector<1x64xf32> to vector<16x64xf32>
    %156 = arith.addf %152, %155 : vector<16x64xf32>
    %cst_59 = arith.constant 5.000000e-01 : f32
    %157 = vector.broadcast %cst_59 : f32 to vector<16x64xf32>
    %158 = arith.mulf %157, %156 : vector<16x64xf32>
    %cst_60 = arith.constant 4.471500e-02 : f32
    %159 = vector.broadcast %cst_60 : f32 to vector<16x64xf32>
    %160 = arith.mulf %159, %156 : vector<16x64xf32>
    %161 = arith.mulf %160, %156 : vector<16x64xf32>
    %162 = arith.mulf %161, %156 : vector<16x64xf32>
    %163 = arith.addf %156, %162 : vector<16x64xf32>
    %cst_61 = arith.constant 0.797884583 : f32
    %164 = vector.broadcast %cst_61 : f32 to vector<16x64xf32>
    %165 = arith.mulf %164, %163 : vector<16x64xf32>
    %166 = math.tanh %165 : vector<16x64xf32>
    %cst_62 = arith.constant 1.000000e+00 : f32
    %167 = vector.broadcast %cst_62 : f32 to vector<16x64xf32>
    %168 = arith.addf %167, %166 : vector<16x64xf32>
    %169 = arith.mulf %158, %168 : vector<16x64xf32>
    %c0_63 = arith.constant 0 : index
    %c0_64 = arith.constant 0 : index
    %c0_65 = arith.constant 0 : index
    %170 = vector.load %arg12[%c0_63, %c0_64, %c0_65] : memref<2x64x32xbf16, #tpu.memory_space<vmem>>, vector<1x64x32xbf16>
    %171 = vector.shape_cast %170 : vector<1x64x32xbf16> to vector<64x32xbf16>
    %172 = arith.truncf %169 : vector<16x64xf32> to vector<16x64xbf16>
    %cst_66 = arith.constant dense<0.000000e+00> : vector<16x32xf32>
    %173 = tpu.matmul %172, %171, %cst_66 {dimension_numbers = #tpu.dot_dimension_numbers<[1], [0], [0], [1], [0, 0, 1, 1], [], []>} : vector<16x64xbf16>, vector<64x32xbf16>, vector<16x32xf32> -> vector<16x32xf32>
    %c0_67 = arith.constant 0 : index
    %c0_68 = arith.constant 0 : index
    %c0_69 = arith.constant 0 : index
    %174 = vector.load %arg13[%c0_67, %c0_68, %c0_69] : memref<2x1x32xf32, #tpu.memory_space<vmem>>, vector<1x1x32xf32>
    %175 = vector.shape_cast %174 : vector<1x1x32xf32> to vector<1x32xf32>
    %176 = vector.broadcast %175 : vector<1x32xf32> to vector<16x32xf32>
    %177 = arith.addf %173, %176 : vector<16x32xf32>
    %178 = arith.addf %177, %148 : vector<16x32xf32>
    %c0_70 = arith.constant 0 : index
    %c0_71 = arith.constant 0 : index
    %c0_72 = arith.constant 0 : index
    %179 = vector.load %arg14[%c0_70, %c0_71, %c0_72] : memref<2x1x32xf32, #tpu.memory_space<vmem>>, vector<1x1x32xf32>
    %180 = vector.shape_cast %179 : vector<1x1x32xf32> to vector<1x32xf32>
    %c0_73 = arith.constant 0 : index
    %c0_74 = arith.constant 0 : index
    %c0_75 = arith.constant 0 : index
    %181 = vector.load %arg15[%c0_73, %c0_74, %c0_75] : memref<2x1x32xf32, #tpu.memory_space<vmem>>, vector<1x1x32xf32>
    %182 = vector.shape_cast %181 : vector<1x1x32xf32> to vector<1x32xf32>
    %cst_76 = arith.constant dense<0.000000e+00> : vector<16xf32>
    %183 = vector.multi_reduction <add>, %178, %cst_76 [1] : vector<16x32xf32> to vector<16xf32>
    %184 = vector.shape_cast %183 : vector<16xf32> to vector<16x1xf32>
    %cst_77 = arith.constant 3.200000e+01 : f32
    %185 = vector.broadcast %cst_77 : f32 to vector<16x1xf32>
    %186 = arith.divf %184, %185 : vector<16x1xf32>
    %187 = vector.broadcast %186 : vector<16x1xf32> to vector<16x32xf32>
    %188 = arith.subf %178, %187 : vector<16x32xf32>
    %189 = arith.mulf %188, %188 : vector<16x32xf32>
    %cst_78 = arith.constant dense<0.000000e+00> : vector<16xf32>
    %190 = vector.multi_reduction <add>, %189, %cst_78 [1] : vector<16x32xf32> to vector<16xf32>
    %191 = vector.shape_cast %190 : vector<16xf32> to vector<16x1xf32>
    %cst_79 = arith.constant 3.200000e+01 : f32
    %192 = vector.broadcast %cst_79 : f32 to vector<16x1xf32>
    %193 = arith.divf %191, %192 : vector<16x1xf32>
    %cst_80 = arith.constant 9.99999996E-13 : f32
    %194 = vector.broadcast %cst_80 : f32 to vector<16x1xf32>
    %195 = arith.addf %193, %194 : vector<16x1xf32>
    %196 = math.rsqrt %195 : vector<16x1xf32>
    %197 = vector.broadcast %196 : vector<16x1xf32> to vector<16x32xf32>
    %198 = arith.mulf %188, %197 : vector<16x32xf32>
    %199 = vector.broadcast %180 : vector<1x32xf32> to vector<16x32xf32>
    %200 = arith.mulf %198, %199 : vector<16x32xf32>
    %201 = vector.broadcast %182 : vector<1x32xf32> to vector<16x32xf32>
    %202 = arith.addf %200, %201 : vector<16x32xf32>
    %c1 = arith.constant 1 : index
    %c0_81 = arith.constant 0 : index
    %c0_82 = arith.constant 0 : index
    %203 = vector.load %arg4[%c1, %c0_81, %c0_82] : memref<2x32x96xbf16, #tpu.memory_space<vmem>>, vector<1x32x96xbf16>
    %204 = vector.shape_cast %203 : vector<1x32x96xbf16> to vector<32x96xbf16>
    %205 = arith.truncf %202 : vector<16x32xf32> to vector<16x32xbf16>
    %cst_83 = arith.constant dense<0.000000e+00> : vector<16x96xf32>
    %206 = tpu.matmul %205, %204, %cst_83 {dimension_numbers = #tpu.dot_dimension_numbers<[1], [0], [0], [1], [0, 0, 1, 1], [], []>} : vector<16x32xbf16>, vector<32x96xbf16>, vector<16x96xf32> -> vector<16x96xf32>
    %c1_84 = arith.constant 1 : index
    %c0_85 = arith.constant 0 : index
    %c0_86 = arith.constant 0 : index
    %207 = vector.load %arg5[%c1_84, %c0_85, %c0_86] : memref<2x1x96xf32, #tpu.memory_space<vmem>>, vector<1x1x96xf32>
    %208 = vector.shape_cast %207 : vector<1x1x96xf32> to vector<1x96xf32>
    %209 = vector.broadcast %208 : vector<1x96xf32> to vector<16x96xf32>
    %210 = arith.addf %206, %209 : vector<16x96xf32>
    %211 = vector.extract_strided_slice %210 {offsets = [0, 0], sizes = [16, 32], strides = [1, 1]} : vector<16x96xf32> to vector<16x32xf32>
    %212 = vector.extract_strided_slice %210 {offsets = [0, 32], sizes = [16, 32], strides = [1, 1]} : vector<16x96xf32> to vector<16x32xf32>
    %213 = vector.extract_strided_slice %210 {offsets = [0, 64], sizes = [16, 32], strides = [1, 1]} : vector<16x96xf32> to vector<16x32xf32>
    %214 = vector.extract_strided_slice %211 {offsets = [0, 0], sizes = [16, 8], strides = [1, 1]} : vector<16x32xf32> to vector<16x8xf32>
    %215 = vector.extract_strided_slice %212 {offsets = [0, 0], sizes = [16, 8], strides = [1, 1]} : vector<16x32xf32> to vector<16x8xf32>
    %216 = arith.truncf %214 : vector<16x8xf32> to vector<16x8xbf16>
    %217 = arith.truncf %215 : vector<16x8xf32> to vector<16x8xbf16>
    %cst_87 = arith.constant dense<0.000000e+00> : vector<16x16xf32>
    %218 = tpu.matmul %216, %217, %cst_87 {dimension_numbers = #tpu.dot_dimension_numbers<[1], [1], [0], [0], [0, 0, 1, 0], [], []>} : vector<16x8xbf16>, vector<16x8xbf16>, vector<16x16xf32> -> vector<16x16xf32>
    %cst_88 = arith.constant dense<0xFF800000> : vector<16xf32>
    %219 = vector.multi_reduction <maximumf>, %218, %cst_88 [1] : vector<16x16xf32> to vector<16xf32>
    %220 = vector.shape_cast %219 : vector<16xf32> to vector<16x1xf32>
    %221 = vector.broadcast %220 : vector<16x1xf32> to vector<16x16xf32>
    %222 = arith.subf %218, %221 : vector<16x16xf32>
    %223 = math.exp %222 : vector<16x16xf32>
    %224 = arith.mulf %223, %0 : vector<16x16xf32>
    %cst_89 = arith.constant dense<0.000000e+00> : vector<16xf32>
    %225 = vector.multi_reduction <add>, %224, %cst_89 [1] : vector<16x16xf32> to vector<16xf32>
    %226 = vector.shape_cast %225 : vector<16xf32> to vector<16x1xf32>
    %227 = tpu.reciprocal %226 {approx = true} : vector<16x1xf32> -> vector<16x1xf32>
    %228 = vector.broadcast %227 : vector<16x1xf32> to vector<16x16xf32>
    %229 = arith.mulf %224, %228 : vector<16x16xf32>
    %230 = vector.extract_strided_slice %213 {offsets = [0, 0], sizes = [16, 8], strides = [1, 1]} : vector<16x32xf32> to vector<16x8xf32>
    %231 = arith.truncf %229 : vector<16x16xf32> to vector<16x16xbf16>
    %232 = arith.truncf %230 : vector<16x8xf32> to vector<16x8xbf16>
    %cst_90 = arith.constant dense<0.000000e+00> : vector<16x8xf32>
    %233 = tpu.matmul %231, %232, %cst_90 {dimension_numbers = #tpu.dot_dimension_numbers<[1], [0], [0], [1], [0, 0, 1, 1], [], []>} : vector<16x16xbf16>, vector<16x8xbf16>, vector<16x8xf32> -> vector<16x8xf32>
    %234 = vector.extract_strided_slice %211 {offsets = [0, 8], sizes = [16, 8], strides = [1, 1]} : vector<16x32xf32> to vector<16x8xf32>
    %235 = vector.extract_strided_slice %212 {offsets = [0, 8], sizes = [16, 8], strides = [1, 1]} : vector<16x32xf32> to vector<16x8xf32>
    %236 = arith.truncf %234 : vector<16x8xf32> to vector<16x8xbf16>
    %237 = arith.truncf %235 : vector<16x8xf32> to vector<16x8xbf16>
    %cst_91 = arith.constant dense<0.000000e+00> : vector<16x16xf32>
    %238 = tpu.matmul %236, %237, %cst_91 {dimension_numbers = #tpu.dot_dimension_numbers<[1], [1], [0], [0], [0, 0, 1, 0], [], []>} : vector<16x8xbf16>, vector<16x8xbf16>, vector<16x16xf32> -> vector<16x16xf32>
    %cst_92 = arith.constant dense<0xFF800000> : vector<16xf32>
    %239 = vector.multi_reduction <maximumf>, %238, %cst_92 [1] : vector<16x16xf32> to vector<16xf32>
    %240 = vector.shape_cast %239 : vector<16xf32> to vector<16x1xf32>
    %241 = vector.broadcast %240 : vector<16x1xf32> to vector<16x16xf32>
    %242 = arith.subf %238, %241 : vector<16x16xf32>
    %243 = math.exp %242 : vector<16x16xf32>
    %244 = arith.mulf %243, %0 : vector<16x16xf32>
    %cst_93 = arith.constant dense<0.000000e+00> : vector<16xf32>
    %245 = vector.multi_reduction <add>, %244, %cst_93 [1] : vector<16x16xf32> to vector<16xf32>
    %246 = vector.shape_cast %245 : vector<16xf32> to vector<16x1xf32>
    %247 = tpu.reciprocal %246 {approx = true} : vector<16x1xf32> -> vector<16x1xf32>
    %248 = vector.broadcast %247 : vector<16x1xf32> to vector<16x16xf32>
    %249 = arith.mulf %244, %248 : vector<16x16xf32>
    %250 = vector.extract_strided_slice %213 {offsets = [0, 8], sizes = [16, 8], strides = [1, 1]} : vector<16x32xf32> to vector<16x8xf32>
    %251 = arith.truncf %249 : vector<16x16xf32> to vector<16x16xbf16>
    %252 = arith.truncf %250 : vector<16x8xf32> to vector<16x8xbf16>
    %cst_94 = arith.constant dense<0.000000e+00> : vector<16x8xf32>
    %253 = tpu.matmul %251, %252, %cst_94 {dimension_numbers = #tpu.dot_dimension_numbers<[1], [0], [0], [1], [0, 0, 1, 1], [], []>} : vector<16x16xbf16>, vector<16x8xbf16>, vector<16x8xf32> -> vector<16x8xf32>
    %254 = vector.extract_strided_slice %211 {offsets = [0, 16], sizes = [16, 8], strides = [1, 1]} : vector<16x32xf32> to vector<16x8xf32>
    %255 = vector.extract_strided_slice %212 {offsets = [0, 16], sizes = [16, 8], strides = [1, 1]} : vector<16x32xf32> to vector<16x8xf32>
    %256 = arith.truncf %254 : vector<16x8xf32> to vector<16x8xbf16>
    %257 = arith.truncf %255 : vector<16x8xf32> to vector<16x8xbf16>
    %cst_95 = arith.constant dense<0.000000e+00> : vector<16x16xf32>
    %258 = tpu.matmul %256, %257, %cst_95 {dimension_numbers = #tpu.dot_dimension_numbers<[1], [1], [0], [0], [0, 0, 1, 0], [], []>} : vector<16x8xbf16>, vector<16x8xbf16>, vector<16x16xf32> -> vector<16x16xf32>
    %cst_96 = arith.constant dense<0xFF800000> : vector<16xf32>
    %259 = vector.multi_reduction <maximumf>, %258, %cst_96 [1] : vector<16x16xf32> to vector<16xf32>
    %260 = vector.shape_cast %259 : vector<16xf32> to vector<16x1xf32>
    %261 = vector.broadcast %260 : vector<16x1xf32> to vector<16x16xf32>
    %262 = arith.subf %258, %261 : vector<16x16xf32>
    %263 = math.exp %262 : vector<16x16xf32>
    %264 = arith.mulf %263, %0 : vector<16x16xf32>
    %cst_97 = arith.constant dense<0.000000e+00> : vector<16xf32>
    %265 = vector.multi_reduction <add>, %264, %cst_97 [1] : vector<16x16xf32> to vector<16xf32>
    %266 = vector.shape_cast %265 : vector<16xf32> to vector<16x1xf32>
    %267 = tpu.reciprocal %266 {approx = true} : vector<16x1xf32> -> vector<16x1xf32>
    %268 = vector.broadcast %267 : vector<16x1xf32> to vector<16x16xf32>
    %269 = arith.mulf %264, %268 : vector<16x16xf32>
    %270 = vector.extract_strided_slice %213 {offsets = [0, 16], sizes = [16, 8], strides = [1, 1]} : vector<16x32xf32> to vector<16x8xf32>
    %271 = arith.truncf %269 : vector<16x16xf32> to vector<16x16xbf16>
    %272 = arith.truncf %270 : vector<16x8xf32> to vector<16x8xbf16>
    %cst_98 = arith.constant dense<0.000000e+00> : vector<16x8xf32>
    %273 = tpu.matmul %271, %272, %cst_98 {dimension_numbers = #tpu.dot_dimension_numbers<[1], [0], [0], [1], [0, 0, 1, 1], [], []>} : vector<16x16xbf16>, vector<16x8xbf16>, vector<16x8xf32> -> vector<16x8xf32>
    %274 = vector.extract_strided_slice %211 {offsets = [0, 24], sizes = [16, 8], strides = [1, 1]} : vector<16x32xf32> to vector<16x8xf32>
    %275 = vector.extract_strided_slice %212 {offsets = [0, 24], sizes = [16, 8], strides = [1, 1]} : vector<16x32xf32> to vector<16x8xf32>
    %276 = arith.truncf %274 : vector<16x8xf32> to vector<16x8xbf16>
    %277 = arith.truncf %275 : vector<16x8xf32> to vector<16x8xbf16>
    %cst_99 = arith.constant dense<0.000000e+00> : vector<16x16xf32>
    %278 = tpu.matmul %276, %277, %cst_99 {dimension_numbers = #tpu.dot_dimension_numbers<[1], [1], [0], [0], [0, 0, 1, 0], [], []>} : vector<16x8xbf16>, vector<16x8xbf16>, vector<16x16xf32> -> vector<16x16xf32>
    %cst_100 = arith.constant dense<0xFF800000> : vector<16xf32>
    %279 = vector.multi_reduction <maximumf>, %278, %cst_100 [1] : vector<16x16xf32> to vector<16xf32>
    %280 = vector.shape_cast %279 : vector<16xf32> to vector<16x1xf32>
    %281 = vector.broadcast %280 : vector<16x1xf32> to vector<16x16xf32>
    %282 = arith.subf %278, %281 : vector<16x16xf32>
    %283 = math.exp %282 : vector<16x16xf32>
    %284 = arith.mulf %283, %0 : vector<16x16xf32>
    %cst_101 = arith.constant dense<0.000000e+00> : vector<16xf32>
    %285 = vector.multi_reduction <add>, %284, %cst_101 [1] : vector<16x16xf32> to vector<16xf32>
    %286 = vector.shape_cast %285 : vector<16xf32> to vector<16x1xf32>
    %287 = tpu.reciprocal %286 {approx = true} : vector<16x1xf32> -> vector<16x1xf32>
    %288 = vector.broadcast %287 : vector<16x1xf32> to vector<16x16xf32>
    %289 = arith.mulf %284, %288 : vector<16x16xf32>
    %290 = vector.extract_strided_slice %213 {offsets = [0, 24], sizes = [16, 8], strides = [1, 1]} : vector<16x32xf32> to vector<16x8xf32>
    %291 = arith.truncf %289 : vector<16x16xf32> to vector<16x16xbf16>
    %292 = arith.truncf %290 : vector<16x8xf32> to vector<16x8xbf16>
    %cst_102 = arith.constant dense<0.000000e+00> : vector<16x8xf32>
    %293 = tpu.matmul %291, %292, %cst_102 {dimension_numbers = #tpu.dot_dimension_numbers<[1], [0], [0], [1], [0, 0, 1, 1], [], []>} : vector<16x16xbf16>, vector<16x8xbf16>, vector<16x8xf32> -> vector<16x8xf32>
    %294 = tpu.concatenate %233, %253, %273, %293 in 1 : vector<16x8xf32>, vector<16x8xf32>, vector<16x8xf32>, vector<16x8xf32> -> vector<16x32xf32>
    %c1_103 = arith.constant 1 : index
    %c0_104 = arith.constant 0 : index
    %c0_105 = arith.constant 0 : index
    %295 = vector.load %arg6[%c1_103, %c0_104, %c0_105] : memref<2x32x32xbf16, #tpu.memory_space<vmem>>, vector<1x32x32xbf16>
    %296 = vector.shape_cast %295 : vector<1x32x32xbf16> to vector<32x32xbf16>
    %297 = arith.truncf %294 : vector<16x32xf32> to vector<16x32xbf16>
    %cst_106 = arith.constant dense<0.000000e+00> : vector<16x32xf32>
    %298 = tpu.matmul %297, %296, %cst_106 {dimension_numbers = #tpu.dot_dimension_numbers<[1], [0], [0], [1], [0, 0, 1, 1], [], []>} : vector<16x32xbf16>, vector<32x32xbf16>, vector<16x32xf32> -> vector<16x32xf32>
    %c1_107 = arith.constant 1 : index
    %c0_108 = arith.constant 0 : index
    %c0_109 = arith.constant 0 : index
    %299 = vector.load %arg7[%c1_107, %c0_108, %c0_109] : memref<2x1x32xf32, #tpu.memory_space<vmem>>, vector<1x1x32xf32>
    %300 = vector.shape_cast %299 : vector<1x1x32xf32> to vector<1x32xf32>
    %301 = vector.broadcast %300 : vector<1x32xf32> to vector<16x32xf32>
    %302 = arith.addf %298, %301 : vector<16x32xf32>
    %303 = arith.addf %302, %202 : vector<16x32xf32>
    %c1_110 = arith.constant 1 : index
    %c0_111 = arith.constant 0 : index
    %c0_112 = arith.constant 0 : index
    %304 = vector.load %arg8[%c1_110, %c0_111, %c0_112] : memref<2x1x32xf32, #tpu.memory_space<vmem>>, vector<1x1x32xf32>
    %305 = vector.shape_cast %304 : vector<1x1x32xf32> to vector<1x32xf32>
    %c1_113 = arith.constant 1 : index
    %c0_114 = arith.constant 0 : index
    %c0_115 = arith.constant 0 : index
    %306 = vector.load %arg9[%c1_113, %c0_114, %c0_115] : memref<2x1x32xf32, #tpu.memory_space<vmem>>, vector<1x1x32xf32>
    %307 = vector.shape_cast %306 : vector<1x1x32xf32> to vector<1x32xf32>
    %cst_116 = arith.constant dense<0.000000e+00> : vector<16xf32>
    %308 = vector.multi_reduction <add>, %303, %cst_116 [1] : vector<16x32xf32> to vector<16xf32>
    %309 = vector.shape_cast %308 : vector<16xf32> to vector<16x1xf32>
    %cst_117 = arith.constant 3.200000e+01 : f32
    %310 = vector.broadcast %cst_117 : f32 to vector<16x1xf32>
    %311 = arith.divf %309, %310 : vector<16x1xf32>
    %312 = vector.broadcast %311 : vector<16x1xf32> to vector<16x32xf32>
    %313 = arith.subf %303, %312 : vector<16x32xf32>
    %314 = arith.mulf %313, %313 : vector<16x32xf32>
    %cst_118 = arith.constant dense<0.000000e+00> : vector<16xf32>
    %315 = vector.multi_reduction <add>, %314, %cst_118 [1] : vector<16x32xf32> to vector<16xf32>
    %316 = vector.shape_cast %315 : vector<16xf32> to vector<16x1xf32>
    %cst_119 = arith.constant 3.200000e+01 : f32
    %317 = vector.broadcast %cst_119 : f32 to vector<16x1xf32>
    %318 = arith.divf %316, %317 : vector<16x1xf32>
    %cst_120 = arith.constant 9.99999996E-13 : f32
    %319 = vector.broadcast %cst_120 : f32 to vector<16x1xf32>
    %320 = arith.addf %318, %319 : vector<16x1xf32>
    %321 = math.rsqrt %320 : vector<16x1xf32>
    %322 = vector.broadcast %321 : vector<16x1xf32> to vector<16x32xf32>
    %323 = arith.mulf %313, %322 : vector<16x32xf32>
    %324 = vector.broadcast %305 : vector<1x32xf32> to vector<16x32xf32>
    %325 = arith.mulf %323, %324 : vector<16x32xf32>
    %326 = vector.broadcast %307 : vector<1x32xf32> to vector<16x32xf32>
    %327 = arith.addf %325, %326 : vector<16x32xf32>
    %c1_121 = arith.constant 1 : index
    %c0_122 = arith.constant 0 : index
    %c0_123 = arith.constant 0 : index
    %328 = vector.load %arg10[%c1_121, %c0_122, %c0_123] : memref<2x32x64xbf16, #tpu.memory_space<vmem>>, vector<1x32x64xbf16>
    %329 = vector.shape_cast %328 : vector<1x32x64xbf16> to vector<32x64xbf16>
    %330 = arith.truncf %327 : vector<16x32xf32> to vector<16x32xbf16>
    %cst_124 = arith.constant dense<0.000000e+00> : vector<16x64xf32>
    %331 = tpu.matmul %330, %329, %cst_124 {dimension_numbers = #tpu.dot_dimension_numbers<[1], [0], [0], [1], [0, 0, 1, 1], [], []>} : vector<16x32xbf16>, vector<32x64xbf16>, vector<16x64xf32> -> vector<16x64xf32>
    %c1_125 = arith.constant 1 : index
    %c0_126 = arith.constant 0 : index
    %c0_127 = arith.constant 0 : index
    %332 = vector.load %arg11[%c1_125, %c0_126, %c0_127] : memref<2x1x64xf32, #tpu.memory_space<vmem>>, vector<1x1x64xf32>
    %333 = vector.shape_cast %332 : vector<1x1x64xf32> to vector<1x64xf32>
    %334 = vector.broadcast %333 : vector<1x64xf32> to vector<16x64xf32>
    %335 = arith.addf %331, %334 : vector<16x64xf32>
    %cst_128 = arith.constant 5.000000e-01 : f32
    %336 = vector.broadcast %cst_128 : f32 to vector<16x64xf32>
    %337 = arith.mulf %336, %335 : vector<16x64xf32>
    %cst_129 = arith.constant 4.471500e-02 : f32
    %338 = vector.broadcast %cst_129 : f32 to vector<16x64xf32>
    %339 = arith.mulf %338, %335 : vector<16x64xf32>
    %340 = arith.mulf %339, %335 : vector<16x64xf32>
    %341 = arith.mulf %340, %335 : vector<16x64xf32>
    %342 = arith.addf %335, %341 : vector<16x64xf32>
    %cst_130 = arith.constant 0.797884583 : f32
    %343 = vector.broadcast %cst_130 : f32 to vector<16x64xf32>
    %344 = arith.mulf %343, %342 : vector<16x64xf32>
    %345 = math.tanh %344 : vector<16x64xf32>
    %cst_131 = arith.constant 1.000000e+00 : f32
    %346 = vector.broadcast %cst_131 : f32 to vector<16x64xf32>
    %347 = arith.addf %346, %345 : vector<16x64xf32>
    %348 = arith.mulf %337, %347 : vector<16x64xf32>
    %c1_132 = arith.constant 1 : index
    %c0_133 = arith.constant 0 : index
    %c0_134 = arith.constant 0 : index
    %349 = vector.load %arg12[%c1_132, %c0_133, %c0_134] : memref<2x64x32xbf16, #tpu.memory_space<vmem>>, vector<1x64x32xbf16>
    %350 = vector.shape_cast %349 : vector<1x64x32xbf16> to vector<64x32xbf16>
    %351 = arith.truncf %348 : vector<16x64xf32> to vector<16x64xbf16>
    %cst_135 = arith.constant dense<0.000000e+00> : vector<16x32xf32>
    %352 = tpu.matmul %351, %350, %cst_135 {dimension_numbers = #tpu.dot_dimension_numbers<[1], [0], [0], [1], [0, 0, 1, 1], [], []>} : vector<16x64xbf16>, vector<64x32xbf16>, vector<16x32xf32> -> vector<16x32xf32>
    %c1_136 = arith.constant 1 : index
    %c0_137 = arith.constant 0 : index
    %c0_138 = arith.constant 0 : index
    %353 = vector.load %arg13[%c1_136, %c0_137, %c0_138] : memref<2x1x32xf32, #tpu.memory_space<vmem>>, vector<1x1x32xf32>
    %354 = vector.shape_cast %353 : vector<1x1x32xf32> to vector<1x32xf32>
    %355 = vector.broadcast %354 : vector<1x32xf32> to vector<16x32xf32>
    %356 = arith.addf %352, %355 : vector<16x32xf32>
    %357 = arith.addf %356, %327 : vector<16x32xf32>
    %c1_139 = arith.constant 1 : index
    %c0_140 = arith.constant 0 : index
    %c0_141 = arith.constant 0 : index
    %358 = vector.load %arg14[%c1_139, %c0_140, %c0_141] : memref<2x1x32xf32, #tpu.memory_space<vmem>>, vector<1x1x32xf32>
    %359 = vector.shape_cast %358 : vector<1x1x32xf32> to vector<1x32xf32>
    %c1_142 = arith.constant 1 : index
    %c0_143 = arith.constant 0 : index
    %c0_144 = arith.constant 0 : index
    %360 = vector.load %arg15[%c1_142, %c0_143, %c0_144] : memref<2x1x32xf32, #tpu.memory_space<vmem>>, vector<1x1x32xf32>
    %361 = vector.shape_cast %360 : vector<1x1x32xf32> to vector<1x32xf32>
    %cst_145 = arith.constant dense<0.000000e+00> : vector<16xf32>
    %362 = vector.multi_reduction <add>, %357, %cst_145 [1] : vector<16x32xf32> to vector<16xf32>
    %363 = vector.shape_cast %362 : vector<16xf32> to vector<16x1xf32>
    %cst_146 = arith.constant 3.200000e+01 : f32
    %364 = vector.broadcast %cst_146 : f32 to vector<16x1xf32>
    %365 = arith.divf %363, %364 : vector<16x1xf32>
    %366 = vector.broadcast %365 : vector<16x1xf32> to vector<16x32xf32>
    %367 = arith.subf %357, %366 : vector<16x32xf32>
    %368 = arith.mulf %367, %367 : vector<16x32xf32>
    %cst_147 = arith.constant dense<0.000000e+00> : vector<16xf32>
    %369 = vector.multi_reduction <add>, %368, %cst_147 [1] : vector<16x32xf32> to vector<16xf32>
    %370 = vector.shape_cast %369 : vector<16xf32> to vector<16x1xf32>
    %cst_148 = arith.constant 3.200000e+01 : f32
    %371 = vector.broadcast %cst_148 : f32 to vector<16x1xf32>
    %372 = arith.divf %370, %371 : vector<16x1xf32>
    %cst_149 = arith.constant 9.99999996E-13 : f32
    %373 = vector.broadcast %cst_149 : f32 to vector<16x1xf32>
    %374 = arith.addf %372, %373 : vector<16x1xf32>
    %375 = math.rsqrt %374 : vector<16x1xf32>
    %376 = vector.broadcast %375 : vector<16x1xf32> to vector<16x32xf32>
    %377 = arith.mulf %367, %376 : vector<16x32xf32>
    %378 = vector.broadcast %359 : vector<1x32xf32> to vector<16x32xf32>
    %379 = arith.mulf %377, %378 : vector<16x32xf32>
    %380 = vector.broadcast %361 : vector<1x32xf32> to vector<16x32xf32>
    %381 = arith.addf %379, %380 : vector<16x32xf32>
    %382 = vector.extract_strided_slice %381 {offsets = [0, 0], sizes = [1, 32], strides = [1, 1]} : vector<16x32xf32> to vector<1x32xf32>
    %383 = vector.extract_strided_slice %381 {offsets = [8, 0], sizes = [1, 32], strides = [1, 1]} : vector<16x32xf32> to vector<1x32xf32>
    %384 = tpu.concatenate %382, %383 in 0 : vector<1x32xf32>, vector<1x32xf32> -> vector<2x32xf32>
    %c0_150 = arith.constant 0 : index
    %c0_151 = arith.constant 0 : index
    %385 = vector.load %arg16[%c0_150, %c0_151] : memref<32x8xbf16, #tpu.memory_space<vmem>>, vector<32x8xbf16>
    %386 = arith.truncf %384 : vector<2x32xf32> to vector<2x32xbf16>
    %cst_152 = arith.constant dense<0.000000e+00> : vector<2x8xf32>
    %387 = tpu.matmul %386, %385, %cst_152 {dimension_numbers = #tpu.dot_dimension_numbers<[1], [0], [0], [1], [0, 0, 1, 1], [], []>} : vector<2x32xbf16>, vector<32x8xbf16>, vector<2x8xf32> -> vector<2x8xf32>
    %c0_153 = arith.constant 0 : index
    %c0_154 = arith.constant 0 : index
    %388 = vector.load %arg17[%c0_153, %c0_154] : memref<1x8xf32, #tpu.memory_space<vmem>>, vector<1x8xf32>
    %389 = vector.broadcast %388 : vector<1x8xf32> to vector<2x8xf32>
    %390 = arith.addf %387, %389 : vector<2x8xf32>
    %c0_155 = arith.constant 0 : index
    %c0_156 = arith.constant 0 : index
    %391 = vector.load %arg18[%c0_155, %c0_156] : memref<2x8xf32, #tpu.memory_space<vmem>>, vector<2x8xf32>
    tpu.vector_store %arg18[%c0_155, %c0_156], %390 {strides = array<i32>} : memref<2x8xf32, #tpu.memory_space<vmem>>, vector<2x8xf32>,
    %392 = tpu.concatenate %50, %70, %90, %110, %229, %249, %269, %289 in 1 : vector<16x16xf32>, vector<16x16xf32>, vector<16x16xf32>, vector<16x16xf32>, vector<16x16xf32>, vector<16x16xf32>, vector<16x16xf32>, vector<16x16xf32> -> vector<16x128xf32>
    %c0_157 = arith.constant 0 : index
    %c0_158 = arith.constant 0 : index
    %393 = vector.load %arg19[%c0_157, %c0_158] : memref<16x128xf32, #tpu.memory_space<vmem>>, vector<16x128xf32>
    tpu.vector_store %arg19[%c0_157, %c0_158], %392 {strides = array<i32>} : memref<16x128xf32, #tpu.memory_space<vmem>>, vector<16x128xf32>,
    return
  }
}

</mosaic_0001>

<bundles_post_ra>
// kernel: bert_classifier_forward.1
= control target key start
LH: loop header
LB: loop body
LE: loop exit
PB: predicated region body
PF: predicated region fallthrough
CT: control target
= control target key end

     0   :  { %s2440_s0 = inlined_call_operand.vmem [shape: f32[16,32], index: 0, kind: input, shape index: {}]   ;;  %s2441_s1 = inlined_call_operand.vmem [shape: f32[16,16], index: 1, kind: input, shape index: {}]   ;;  %s2442_s2 = inlined_call_operand.vmem [shape: f32[1,32], index: 2, kind: input, shape index: {}]   ;;  %s2443_s3 = inlined_call_operand.vmem [shape: f32[1,32], index: 3, kind: input, shape index: {}]   ;;  %s2444_s4 = inlined_call_operand.vmem [shape: bf16[2,32,96], index: 4, kind: input, shape index: {}]   ;;  %s2445_s5 = inlined_call_operand.vmem [shape: f32[2,1,96], index: 5, kind: input, shape index: {}]   ;;  %s2446_s6 = inlined_call_operand.vmem [shape: bf16[2,32,32], index: 6, kind: input, shape index: {}]   ;;  %s2447_s7 = inlined_call_operand.vmem [shape: f32[2,1,32], index: 7, kind: input, shape index: {}]   ;;  %s2448_s8 = inlined_call_operand.vmem [shape: f32[2,1,32], index: 8, kind: input, shape index: {}]   ;;  %s2449_s9 = inlined_call_operand.vmem [shape: f32[2,1,32], index: 9, kind: input, shape index: {}]   ;;  %s2450_s10 = inlined_call_operand.vmem [shape: bf16[2,32,64], index: 10, kind: input, shape index: {}]   ;;  %s2451_s11 = inlined_call_operand.vmem [shape: f32[2,1,64], index: 11, kind: input, shape index: {}]   ;;  %s2452_s12 = inlined_call_operand.vmem [shape: bf16[2,64,32], index: 12, kind: input, shape index: {}]   ;;  %s2453_s13 = inlined_call_operand.vmem [shape: f32[2,1,32], index: 13, kind: input, shape index: {}]   ;;  %s2454_s14 = inlined_call_operand.vmem [shape: f32[2,1,32], index: 14, kind: input, shape index: {}]   ;;  %s2455_s15 = inlined_call_operand.vmem [shape: f32[2,1,32], index: 15, kind: input, shape index: {}]   ;;  %s2456_s16 = inlined_call_operand.vmem [shape: bf16[32,8], index: 16, kind: input, shape index: {}]   ;;  %s2457_s17 = inlined_call_operand.vmem [shape: f32[1,8], index: 17, kind: input, shape index: {}]   ;;  %s2458_s18 = inlined_call_operand.hbm [shape: f32[2,8], index: 18, kind: output, shape index: {0}]   ;;  %s2459_s19 = inlined_call_operand.vmem [shape: f32[16,128], index: 19, kind: output, shape index: {1}]  }
   0x1   :  { %2475 = sst [smem:[#allocation5_spill]] %s2440_s0 }
   0x2   :  { %2476 = sst [smem:[#allocation6_spill]] %s2441_s1 }
   0x3   :  { %2477 = sst [smem:[#allocation7_spill]] %s2442_s2 }
   0x4   :  { %2478 = sst [smem:[#allocation8_spill]] %s2443_s3 }
   0x5   :  { %s2479_s20 = sld [smem:[#allocation5_spill]]  ;;  %vm69_vm0 = vcmask 261120  }
   0xb   :  { %v65_v0 = vld [vmem:[%s2479_s20] sm:$0xff]  ;;  %v66_v2 = vld [vmem:[%s2479_s20 + $0x8] sm:$0xff] }
   0xc   :  { %v70_v1 = vsel %vm69_vm0, %v65_v0, 0.0  ;;  %v73_v3 = vsel %vm69_vm0, %v66_v2, 0.0 }
   0xd   :  { %71 = vadd.xlane.f32.xlu0 %v70_v1 }
   0xe   :  { %25 = vsyncpa [#allocation3], 0  ;;  %v1852_v4 = vmov 32.0   ;;  %v1645_v21 = vld [vmem:[%s2444_s4 + $0x8] sm:$0xff]  ;;  %v1644_v23 = vld [vmem:[%s2444_s4] sm:$0xff]  ;;  %s2480_s26 = sld [smem:[#allocation7_spill]] }
   0xf   :  { %1732 = vrcp.f32 %v1852_v4  ;;  %161 = vmatpush.bf16.msra.mxu0 %v1645_v21  ;;  %s2481_s29 = sld [smem:[#allocation8_spill]]  ;;  %v1715_v53 = vld [vmem:[%s2445_s5] ss:$0 sm:$0xff]  ;;  %s1853_s20 = smov 72   ;;  %vm173_vm8 = vcmask 64512   ;;  %vm194_vm9 = vcmask 130048  }
  0x10   :  { %s1854_s21 = smov 120   ;;  %s1855_s1 = smov 96   ;;  %vm475_vm10 = vcmask 195584  }
  0x11   :  { %s1856_s22 = smov 88   ;;  %s2474_s2 = smov 104  }
  0x12   :  { %s1858_s23 = smov 80   ;;  %s2472_s24 = smov 112  }
  0x13   :  { %162 = vmatpush.bf16.msra.mxu0 %v1644_v23  ;;  %s2470_s25 = smov 64   ;;  %s2465_s3 = smov 56  }
  0x14   :  { %v1713_v42 = vld [vmem:[%s2480_s26] ss:$0 sm:$0xff]  ;;  %s2482_s28 = sld [smem:[#allocation6_spill]]  ;;  %s2462_s30 = smov 40  }
  0x15   :  { %74 = vadd.xlane.f32.xlu0 %v73_v3  ;;  %v1733_v5 = vpop.eup %1732  ;;  %v1714_v47 = vld [vmem:[%s2481_s29] ss:$0 sm:$0xff]  ;;  %s2463_s26 = smov 48   ;;  %s2469_s27 = smov 8  }
  0x16   :  { %v77_v6 = vmul.f32 32.0, %v1733_v5  ;;  %vm81_vm1 = vweird.f32 %v1733_v5  ;;  %s2466_s29 = smov 16  }
  0x18   :  { %v78_v7 = vsub.f32 1.0, %v77_v6 }
  0x1a   :  { %v79_v8 = vmul.f32 %v1733_v5, %v78_v7 }
  0x1c   :  { %v80_v9 = vadd.f32 %v1733_v5, %v79_v8 }
  0x1e   :  { %v1977_v10 = vsel %vm81_vm1, %v1733_v5, %v80_v9 }
  0x80   :  { %v72_v11 = vpop.xlane.xlu0 %71 }
  0x81   :  { %v83_v12 = vmul.f32 %v1977_v10, %v72_v11 }
  0x83   :  { %v85_v13 = vsub.f32 %v65_v0, %v83_v12 }
  0x85   :  { %v87_v14 = vmul.f32 %v85_v13, %v85_v13 }
  0x87   :  { %v89_v15 = vsel %vm69_vm0, %v87_v14, 0.0 }
  0x88   :  { %90 = vadd.xlane.f32.xlu1 %v89_v15  ;;  %v75_v16 = vpop.xlane.xlu0 %74 }
  0x89   :  { %v84_v17 = vmul.f32 %v1977_v10, %v75_v16 }
  0x8b   :  { %v86_v18 = vsub.f32 %v66_v2, %v84_v17 }
  0x8d   :  { %v88_v19 = vmul.f32 %v86_v18, %v86_v18 }
  0x8f   :  { %v92_v20 = vsel %vm69_vm0, %v88_v19, 0.0 }
  0x90   :  { %93 = vadd.xlane.f32.xlu1 %v92_v20 }
  0xfb   :  { %v91_v22 = vpop.xlane.xlu1 %90 }
  0xfc   :  { %v95_v24 = vmul.f32 %v91_v22, %v1977_v10 }
  0xfe   :  { %v97_v25 = vadd.f32 1e-12, %v95_v24 }
 0x100   :  { %1734 = vrsqrt.f32 %v97_v25  ;;  %vm105_vm3 = vweird.f32 %v97_v25 }
 0x103   :  { %v94_v26 = vpop.xlane.xlu1 %93 }
 0x104   :  { %v96_v27 = vmul.f32 %v94_v26, %v1977_v10 }
 0x106   :  { %v1735_v28 = vpop.eup %1734  ;;  %v98_v29 = vadd.f32 1e-12, %v96_v27  ;;  %v2050_v27 = vld [vmem:[%s2482_s28] sm:$0xff] }
 0x107   :  { %v100_v30 = vmul.f32 %v1735_v28, %v97_v25  ;;  %vm106_vm2 = vweird.f32 %v1735_v28 }
 0x108   :  { %1736 = vrsqrt.f32 %v98_v29  ;;  %vm107_vm4 = vmor %vm105_vm3, %vm106_vm2  ;;  %vm115_vm6 = vweird.f32 %v98_v29  ;;  %vm667_vm2 = vcmask 523264  }
 0x109   :  { %v101_v31 = vmul.f32 %v1735_v28, %v100_v30 }
 0x10b   :  { %v102_v32 = vmul.f32 0.5, %v101_v31 }
 0x10d   :  { %v103_v33 = vsub.f32 1.5, %v102_v32  ;;  %v2060_v32 = vld [vmem:[%s2482_s28 + $0x8] sm:$0xff]  ;;  %s2468_s28 = smov 24  }
 0x10e   :  { %v1737_v34 = vpop.eup %1736 }
 0x10f   :  { %v104_v35 = vmul.f32 %v1735_v28, %v103_v33  ;;  %v110_v36 = vmul.f32 %v1737_v34, %v98_v29  ;;  %vm116_vm5 = vweird.f32 %v1737_v34 }
 0x110   :  { %vm117_vm7 = vmor %vm115_vm6, %vm116_vm5 }
 0x111   :  { %v111_v37 = vmul.f32 %v1737_v34, %v110_v36  ;;  %v108_v38 = vsel %vm107_vm4, %v1735_v28, %v104_v35 }
 0x112   :  { %v119_v41 = vmul.f32 %v108_v38, %v85_v13 }
 0x113   :  { %v112_v39 = vmul.f32 0.5, %v111_v37 }
 0x114   :  { %v124_v46 = vmul.f32 %v1713_v42, %v119_v41 }
 0x115   :  { %v113_v40 = vsub.f32 1.5, %v112_v39 }
 0x116   :  { %v1997_v49 = vadd.f32 %v1714_v47, %v124_v46 }
 0x117   :  { %v114_v43 = vmul.f32 %v1737_v34, %v113_v40 }
 0x119   :  { %v118_v44 = vsel %vm117_vm7, %v1737_v34, %v114_v43 }
 0x11a   :  { %v120_v45 = vmul.f32 %v118_v44, %v86_v18 }
 0x11c   :  { %v125_v48 = vmul.f32 %v1713_v42, %v120_v45 }
 0x11e   :  { %v1999_v50 = vadd.f32 %v1714_v47, %v125_v48 }
 0x120   :  { %v135_v51 = vpack.c.bf16 %v1999_v50, %v1997_v49 }
 0x122   :  { %1511 = vmatmul.msk.bf16.vlgmr.msra.gmra.mxu0 %vm69_vm0, %v135_v51 }
 0x19f   :  { %v164_v52 = vpop.f32.mrf.mxu0 }
 0x1a0   :  { %v165_v55 = vadd.f32 %v1715_v53, %v164_v52 }
 0x1a7   :  { %v166_v54 = vpop.f32.mrf.mxu0 }
 0x1a8   :  { %v167_v56 = vadd.f32 %v1715_v53, %v166_v54 }
 0x1aa   :  { %v2007_v57 = vpack.c.bf16 %v167_v56, %v165_v55 }
 0x1ac   :  { %380 = vrot.lane.b32.xlu1 %v2007_v57, %s1853_s20  ;;  %240 = vrot.lane.b32.xlu0 %v2007_v57, %s1854_s21 }
 0x1ad   :  { %171 = vrot.lane.b32.xlu2 %v2007_v57, %s1855_s1 }
 0x1b5   :  { %242 = vrot.lane.b32.xlu2 %v2007_v57, %s1856_s22 }
 0x1bd   :  { %378 = vrot.lane.b32.xlu2 %v2007_v57, %s2474_s2  ;;  %s1867_s2 = smov 32  }
 0x1c5   :  { %311 = vrot.lane.b32.xlu2 %v2007_v57, %s1858_s23 }
 0x1cd   :  { %309 = vrot.lane.b32.xlu2 %v2007_v57, %s2472_s24  ;;  %s2484_s24 = smov 112  }
 0x207   :  { %v172_v58 = vpop.permute.xlu2 %171 }
 0x208   :  { %v178_v59 = vsel %vm173_vm8, %v172_v58, 0 }
 0x209   :  { %187 = vmatpush.bf16.xpose.msra.mxu1 %v178_v59 }
 0x20f   :  { %v243_v60 = vpop.permute.xlu2 %242 }
 0x210   :  { %1512 = vmatmul.msk.bf16.vlgmr.msra.gmra.mxu1 %vm173_vm8, %v2007_v57  ;;  %v248_v61 = vsel %vm173_vm8, %v243_v60, 0 }
 0x211   :  { %257 = vmatpush.bf16.xpose.msra.mxu3 %v248_v61 }
 0x217   :  { %v379_v62 = vpop.permute.xlu2 %378 }
 0x21e   :  { %v381_v63 = vpop.permute.xlu1 %380  ;;  %v241_v0 = vpop.permute.xlu0 %240 }
 0x21f   :  { %v312_v1 = vpop.permute.xlu2 %311  ;;  %1514 = vmatmul.msk.bf16.vlgmr.msra.gmra.mxu3 %vm173_vm8, %v241_v0  ;;  %v386_v2 = vsel %vm173_vm8, %v381_v63, 0 }
 0x220   :  { %v317_v3 = vsel %vm173_vm8, %v312_v1, 0  ;;  %395 = vmatpush.bf16.xpose.msrb.mxu3 %v386_v2 }
 0x221   :  { %326 = vmatpush.bf16.xpose.msrb.mxu0 %v317_v3 }
 0x227   :  { %v310_v4 = vpop.permute.xlu2 %309 }
 0x228   :  { %1516 = vmatmul.msk.bf16.vlgmr.msrb.gmra.mxu0 %vm173_vm8, %v310_v4 }
 0x22f   :  { %1518 = vmatmul.msk.bf16.vlgmr.msrb.gmra.mxu3 %vm173_vm8, %v379_v62 }
 0x28d   :  { %v189_v5 = vpop.f32.mrf.mxu1 }
 0x28e   :  { %v195_v6 = vsel %vm194_vm9, %v189_v5, -inf }
 0x28f   :  { %196 = vmax.xlane.f32.xlu0 %v195_v6 }
 0x295   :  { %v191_v7 = vpop.f32.mrf.mxu1 }
 0x296   :  { %v198_v8 = vsel %vm194_vm9, %v191_v7, -inf }
 0x297   :  { %199 = vmax.xlane.f32.xlu2 %v198_v8 }
 0x2a2   :  { %v259_v9 = vpop.f32.mrf.mxu3 }
 0x2a3   :  { %v264_v11 = vsel %vm194_vm9, %v259_v9, -inf }
 0x2a4   :  { %265 = vmax.xlane.f32.xlu1 %v264_v11 }
 0x2a5   :  { %v328_v12 = vpop.f32.mrf.mxu0 }
 0x2a6   :  { %v333_v18 = vsel %vm194_vm9, %v328_v12, -inf }
 0x2aa   :  { %v261_v13 = vpop.f32.mrf.mxu3 }
 0x2ab   :  { %v267_v14 = vsel %vm194_vm9, %v261_v13, -inf }
 0x2ac   :  { %268 = vmax.xlane.f32.xlu0 %v267_v14 }
 0x2ad   :  { %v330_v15 = vpop.f32.mrf.mxu0 }
 0x2ae   :  { %v336_v16 = vsel %vm194_vm9, %v330_v15, -inf }
 0x2af   :  { %337 = vmax.xlane.f32.xlu2 %v336_v16 }
 0x2b2   :  { %v397_v17 = vpop.f32.mrf.mxu3 }
 0x2b3   :  { %v402_v19 = vsel %vm194_vm9, %v397_v17, -inf }
 0x2b4   :  { %334 = vmax.xlane.f32.xlu0 %v333_v18 }
 0x2b7   :  { %403 = vmax.xlane.f32.xlu2 %v402_v19 }
 0x2ba   :  { %v2039_v20 = vpop.f32.mrf.mxu3 }
 0x2bb   :  { %v405_v21 = vsel %vm194_vm9, %v2039_v20, -inf }
 0x2bc   :  { %406 = vmax.xlane.f32.xlu1 %v405_v21 }
 0x2cf   :  { %220 = vrot.lane.b32.xlu2 %v2007_v57, %s2470_s25  ;;  %s2488_s25 = smov 40  }
 0x2d5   :  { %289 = vrot.lane.b32.xlu1 %v2007_v57, %s2465_s3 }
 0x302   :  { %v197_v22 = vpop.xlane.xlu0 %196 }
 0x303   :  { %v201_v23 = vsub.f32 %v189_v5, %v197_v22 }
 0x305   :  { %v203_v24 = vmul.f32 1.442695, %v201_v23 }
 0x307   :  { %1738 = vpow2.f32 %v203_v24 }
 0x30a   :  { %v200_v25 = vpop.xlane.xlu2 %199 }
 0x30b   :  { %v202_v26 = vsub.f32 %v191_v7, %v200_v25 }
 0x30d   :  { %v1739_v28 = vpop.eup %1738  ;;  %v205_v29 = vmul.f32 1.442695, %v202_v26 }
 0x30e   :  { %v2053_v30 = vmul.f32 %v1739_v28, %v2050_v27 }
 0x30f   :  { %1740 = vpow2.f32 %v205_v29 }
 0x310   :  { %v209_v31 = vsel %vm194_vm9, %v2053_v30, 0.0 }
 0x311   :  { %210 = vadd.xlane.f32.xlu1 %v209_v31 }
 0x315   :  { %v1741_v33 = vpop.eup %1740 }
 0x316   :  { %v2063_v34 = vmul.f32 %v1741_v33, %v2060_v32 }
 0x317   :  { %v266_v35 = vpop.xlane.xlu1 %265 }
 0x318   :  { %v270_v36 = vsub.f32 %v259_v9, %v266_v35  ;;  %v212_v37 = vsel %vm194_vm9, %v2063_v34, 0.0 }
 0x319   :  { %213 = vadd.xlane.f32.xlu0 %v212_v37 }
 0x31a   :  { %v272_v38 = vmul.f32 1.442695, %v270_v36 }
 0x31c   :  { %1742 = vpow2.f32 %v272_v38 }
 0x31f   :  { %v269_v39 = vpop.xlane.xlu0 %268 }
 0x320   :  { %v271_v42 = vsub.f32 %v261_v13, %v269_v39 }
 0x322   :  { %v1743_v40 = vpop.eup %1742  ;;  %v338_v41 = vpop.xlane.xlu2 %337  ;;  %v274_v47 = vmul.f32 1.442695, %v271_v42 }
 0x323   :  { %v340_v43 = vsub.f32 %v330_v15, %v338_v41  ;;  %v2068_v44 = vmul.f32 %v1743_v40, %v2050_v27 }
 0x325   :  { %v343_v45 = vmul.f32 1.442695, %v340_v43  ;;  %v278_v46 = vsel %vm194_vm9, %v2068_v44, 0.0 }
 0x326   :  { %279 = vadd.xlane.f32.xlu1 %v278_v46 }
 0x327   :  { %1744 = vpow2.f32 %v343_v45  ;;  %v335_v48 = vpop.xlane.xlu0 %334 }
 0x328   :  { %v339_v51 = vsub.f32 %v328_v12, %v335_v48  ;;  %1746 = vpow2.f32 %v274_v47 }
 0x32a   :  { %v341_v52 = vmul.f32 1.442695, %v339_v51  ;;  %v404_v53 = vpop.xlane.xlu2 %403 }
 0x32b   :  { %v408_v54 = vsub.f32 %v397_v17, %v404_v53 }
 0x32c   :  { %1748 = vpow2.f32 %v341_v52 }
 0x32d   :  { %v1745_v55 = vpop.eup %1744  ;;  %v410_v58 = vmul.f32 1.442695, %v408_v54 }
 0x32e   :  { %v2073_v56 = vmul.f32 %v1745_v55, %v2060_v32  ;;  %v1747_v61 = vpop.eup %1746 }
 0x32f   :  { %v407_v59 = vpop.xlane.xlu1 %406  ;;  %1750 = vpow2.f32 %v410_v58  ;;  %v277_v2 = vmul.f32 %v1747_v61, %v2060_v32 }
 0x330   :  { %v350_v60 = vsel %vm194_vm9, %v2073_v56, 0.0  ;;  %v409_v0 = vsub.f32 %v2039_v20, %v407_v59  ;;  %v1647_v59 = vld [vmem:[%s2446_s6 + $0x8] sm:$0xff] }
 0x331   :  { %351 = vadd.xlane.f32.xlu0 %v350_v60  ;;  %v281_v5 = vsel %vm194_vm9, %v277_v2, 0.0  ;;  %508 = vmatpush.bf16.msra.mxu0 %v1647_v59  ;;  %v1646_v60 = vld [vmem:[%s2446_s6] sm:$0xff] }
 0x332   :  { %v1749_v62 = vpop.eup %1748  ;;  %v221_v63 = vpop.permute.xlu2 %220  ;;  %v412_v4 = vmul.f32 1.442695, %v409_v0 }
 0x333   :  { %233 = vmatpush.bf16.msra.mxu2 %v221_v63  ;;  %v345_v1 = vmul.f32 %v1749_v62, %v2050_v27 }
 0x334   :  { %1752 = vpow2.f32 %v412_v4 }
 0x335   :  { %v347_v3 = vsel %vm194_vm9, %v345_v1, 0.0  ;;  %v1751_v6 = vpop.eup %1750  ;;  %509 = vmatpush.bf16.msra.mxu0 %v1646_v60 }
 0x336   :  { %348 = vadd.xlane.f32.xlu2 %v347_v3  ;;  %v414_v7 = vmul.f32 %v1751_v6, %v2050_v27 }
 0x338   :  { %v416_v8 = vsel %vm194_vm9, %v414_v7, 0.0 }
 0x339   :  { %282 = vadd.xlane.f32.xlu0 %v281_v5 }
 0x33a   :  { %v1753_v9 = vpop.eup %1752 }
 0x33b   :  { %v415_v11 = vmul.f32 %v1753_v9, %v2060_v32 }
 0x33d   :  { %v419_v13 = vsel %vm194_vm9, %v415_v11, 0.0 }
 0x33f   :  { %427 = vrot.lane.b32.xlu1 %v2007_v57, %s2462_s30 }
 0x341   :  { %417 = vadd.xlane.f32.xlu0 %v416_v8 }
 0x347   :  { %v290_v12 = vpop.permute.xlu1 %289 }
 0x348   :  { %302 = vmatpush.bf16.msrb.mxu2 %v290_v12 }
 0x349   :  { %420 = vadd.xlane.f32.xlu0 %v419_v13 }
 0x35d   :  { %358 = vrot.lane.b32.xlu0 %v2007_v57, %s2463_s26 }
 0x384   :  { %v211_v14 = vpop.xlane.xlu1 %210 }
 0x385   :  { %1754 = vrcp.f32 %v211_v14  ;;  %v1716_v14 = vld [vmem:[%s2447_s7] ss:$0 sm:$0xff] }
 0x38b   :  { %v1755_v16 = vpop.eup %1754 }
 0x38c   :  { %v214_v15 = vpop.xlane.xlu0 %213  ;;  %v2091_v18 = vmul.f32 %v1755_v16, %v2053_v30 }
 0x38d   :  { %1756 = vrcp.f32 %v214_v15 }
 0x393   :  { %v1757_v17 = vpop.eup %1756 }
 0x394   :  { %v2094_v19 = vmul.f32 %v1757_v17, %v2063_v34 }
 0x396   :  { %v219_v20 = vpack.c.bf16 %v2094_v19, %v2091_v18 }
 0x398   :  { %1513 = vmatmul.msk.bf16.vlgmr.msra.gmra.mxu2 %vm194_vm9, %v219_v20 }
 0x399   :  { %v280_v22 = vpop.xlane.xlu1 %279 }
 0x39a   :  { %1758 = vrcp.f32 %v280_v22 }
 0x3a0   :  { %v1759_v23 = vpop.eup %1758 }
 0x3a1   :  { %v2100_v26 = vmul.f32 %v1759_v23, %v2068_v44 }
 0x3a4   :  { %v352_v21 = vpop.xlane.xlu0 %351 }
 0x3a9   :  { %v349_v34 = vpop.xlane.xlu2 %348 }
 0x3ac   :  { %v283_v57 = vpop.xlane.xlu0 %282 }
 0x3ad   :  { %1760 = vrcp.f32 %v283_v57 }
 0x3b1   :  { %v428_v24 = vpop.permute.xlu1 %427 }
 0x3b2   :  { %440 = vmatpush.bf16.msra.mxu2 %v428_v24 }
 0x3b3   :  { %v1761_v25 = vpop.eup %1760 }
 0x3b4   :  { %v2102_v28 = vmul.f32 %v1761_v25, %v277_v2  ;;  %v418_v29 = vpop.xlane.xlu0 %417 }
 0x3b5   :  { %1762 = vrcp.f32 %v418_v29 }
 0x3b6   :  { %v288_v30 = vpack.c.bf16 %v2102_v28, %v2100_v26 }
 0x3b8   :  { %1515 = vmatmul.msk.bf16.vlgmr.msrb.gmra.mxu2 %vm194_vm9, %v288_v30 }
 0x3bb   :  { %v1763_v33 = vpop.eup %1762 }
 0x3bc   :  { %v421_v31 = vpop.xlane.xlu0 %420  ;;  %v2107_v36 = vmul.f32 %v1763_v33, %v414_v7 }
 0x3bd   :  { %1764 = vrcp.f32 %v421_v31 }
 0x3be   :  { %1766 = vrcp.f32 %v349_v34 }
 0x3bf   :  { %1768 = vrcp.f32 %v352_v21 }
 0x3c3   :  { %v1765_v35 = vpop.eup %1764 }
 0x3c4   :  { %v2109_v37 = vmul.f32 %v1765_v35, %v415_v11  ;;  %v1767_v39 = vpop.eup %1766 }
 0x3c5   :  { %v1769_v40 = vpop.eup %1768  ;;  %v2114_v41 = vmul.f32 %v1767_v39, %v345_v1 }
 0x3c6   :  { %v426_v38 = vpack.c.bf16 %v2109_v37, %v2107_v36  ;;  %v2117_v42 = vmul.f32 %v1769_v40, %v2073_v56 }
 0x3c8   :  { %1519 = vmatmul.msk.bf16.vlgmr.msra.gmra.mxu2 %vm194_vm9, %v426_v38  ;;  %v357_v44 = vpack.c.bf16 %v2117_v42, %v2114_v41 }
 0x3cf   :  { %v359_v43 = vpop.permute.xlu0 %358 }
 0x3d0   :  { %371 = vmatpush.bf16.msrb.mxu1 %v359_v43  ;;  %v1648_v43 = vld [vmem:[%s2450_s10] sm:$0xff] }
 0x3d3   :  { %1517 = vmatmul.msk.bf16.vlgmr.msrb.gmra.mxu1 %vm194_vm9, %v357_v44 }
 0x41b   :  { %v235_v45 = vpop.f32.mrf.mxu2 }
 0x423   :  { %v237_v46 = vpop.f32.mrf.mxu2 }
 0x43b   :  { %v304_v47 = vpop.f32.mrf.mxu2 }
 0x443   :  { %v306_v48 = vpop.f32.mrf.mxu2 }
 0x444   :  { %v1683_v51 = vpack.i.bf16 %v306_v48, %v304_v47 }
 0x446   :  { %1684 = vrot.lane.b32.xlu1 %v1683_v51, %s2469_s27  ;;  %s2489_s27 = smov 8  }
 0x44b   :  { %v442_v52 = vpop.f32.mrf.mxu2 }
 0x450   :  { %v373_v53 = vpop.f32.mrf.mxu1 }
 0x453   :  { %v444_v54 = vpop.f32.mrf.mxu2 }
 0x454   :  { %v1693_v55 = vpack.i.bf16 %v444_v54, %v442_v52 }
 0x456   :  { %1694 = vrot.lane.b32.xlu0 %v1693_v55, %s2468_s28  ;;  %s2490_s28 = smov 24  }
 0x458   :  { %v375_v56 = vpop.f32.mrf.mxu1 }
 0x459   :  { %v1688_v58 = vpack.i.bf16 %v375_v56, %v373_v53 }
 0x45b   :  { %1689 = vrot.lane.b32.xlu1 %v1688_v58, %s2466_s29  ;;  %s2491_s29 = smov 16  }
 0x4b8   :  { %v1685_v61 = vpop.permute.xlu1 %1684 }
 0x4b9   :  { %v1687_v62 = vunpack.i.h.bf16 %v1685_v61  ;;  %v1686_v63 = vunpack.i.l.bf16 %v1685_v61 }
 0x4bb   :  { %v472_v4 = vsel %vm173_vm8, %v237_v46, %v1687_v62  ;;  %v471_v5 = vsel %vm173_vm8, %v235_v45, %v1686_v63  ;;  %v1717_v63 = vld [vmem:[%s2448_s8] ss:$0 sm:$0xff] }
 0x4c8   :  { %v1695_v0 = vpop.permute.xlu0 %1694 }
 0x4c9   :  { %v1697_v6 = vunpack.i.h.bf16 %v1695_v0  ;;  %v1696_v7 = vunpack.i.l.bf16 %v1695_v0 }
 0x4cd   :  { %v1690_v1 = vpop.permute.xlu1 %1689 }
 0x4ce   :  { %v1692_v2 = vunpack.i.h.bf16 %v1690_v1  ;;  %v1691_v3 = vunpack.i.l.bf16 %v1690_v1 }
 0x4d0   :  { %v473_v8 = vsel %vm194_vm9, %v471_v5, %v1691_v3  ;;  %v474_v9 = vsel %vm194_vm9, %v472_v4, %v1692_v2  ;;  %v1718_v3 = vld [vmem:[%s2449_s9] ss:$0 sm:$0xff] }
 0x4d1   :  { %v476_v11 = vsel %vm475_vm10, %v473_v8, %v1696_v7  ;;  %v477_v12 = vsel %vm475_vm10, %v474_v9, %v1697_v6 }
 0x4d2   :  { %v482_v13 = vpack.c.bf16 %v477_v12, %v476_v11  ;;  %v1653_v11 = vld [vmem:[%s2452_s12 + $0x18] sm:$0xff]  ;;  %v1652_v12 = vld [vmem:[%s2452_s12 + $0x10] sm:$0xff] }
 0x4d3   :  { %675 = vmatpush.bf16.msra.mxu3 %v1653_v11 }
 0x4d4   :  { %1528 = vmatmul.msk.bf16.vlgmr.msra.gmra.mxu0 %vm69_vm0, %v482_v13  ;;  %v1651_v13 = vld [vmem:[%s2452_s12 + $0x8] sm:$0xff] }
 0x4d7   :  { %676 = vmatpush.bf16.msra.mxu3 %v1652_v12 }
 0x4db   :  { %677 = vmatpush.bf16.msra.mxu3 %v1651_v13 }
 0x551   :  { %v511_v15 = vpop.f32.mrf.mxu0 }
 0x552   :  { %v512_v16 = vadd.f32 %v1716_v14, %v511_v15  ;;  %v1719_v15 = vld [vmem:[%s2451_s11] ss:$0 sm:$0xff] }
 0x554   :  { %v516_v17 = vadd.f32 %v512_v16, %v1997_v49 }
 0x556   :  { %v520_v20 = vsel %vm69_vm0, %v516_v17, 0.0 }
 0x557   :  { %521 = vadd.xlane.f32.xlu1 %v520_v20 }
 0x559   :  { %v513_v21 = vpop.f32.mrf.mxu0 }
 0x55a   :  { %v514_v22 = vadd.f32 %v1716_v14, %v513_v21  ;;  %v1650_v14 = vld [vmem:[%s2452_s12] sm:$0xff] }
 0x55b   :  { %678 = vmatpush.bf16.msra.mxu3 %v1650_v14 }
 0x55c   :  { %v517_v57 = vadd.f32 %v514_v22, %v1999_v50  ;;  %v1649_v50 = vld [vmem:[%s2450_s10 + $0x8] sm:$0xff] }
 0x55d   :  { %604 = vmatpush.bf16.msra.mxu1 %v1649_v50 }
 0x55e   :  { %v523_v23 = vsel %vm69_vm0, %v517_v57, 0.0 }
 0x55f   :  { %524 = vadd.xlane.f32.xlu0 %v523_v23 }
 0x561   :  { %605 = vmatpush.bf16.msra.mxu1 %v1648_v43 }
 0x5ca   :  { %v522_v24 = vpop.xlane.xlu1 %521 }
 0x5cb   :  { %v526_v25 = vmul.f32 %v522_v24, %v1977_v10 }
 0x5cd   :  { %v528_v29 = vsub.f32 %v516_v17, %v526_v25 }
 0x5cf   :  { %v530_v30 = vmul.f32 %v528_v29, %v528_v29 }
 0x5d1   :  { %v532_v31 = vsel %vm69_vm0, %v530_v30, 0.0 }
 0x5d2   :  { %v525_v33 = vpop.xlane.xlu0 %524  ;;  %533 = vadd.xlane.f32.xlu2 %v532_v31 }
 0x5d3   :  { %v527_v49 = vmul.f32 %v525_v33, %v1977_v10 }
 0x5d5   :  { %v529_v34 = vsub.f32 %v517_v57, %v527_v49 }
 0x5d7   :  { %v531_v35 = vmul.f32 %v529_v34, %v529_v34 }
 0x5d9   :  { %v535_v38 = vsel %vm69_vm0, %v531_v35, 0.0 }
 0x5da   :  { %536 = vadd.xlane.f32.xlu2 %v535_v38 }
 0x645   :  { %v534_v39 = vpop.xlane.xlu2 %533 }
 0x646   :  { %v538_v40 = vmul.f32 %v534_v39, %v1977_v10 }
 0x648   :  { %v540_v44 = vadd.f32 1e-12, %v538_v40 }
 0x64a   :  { %1770 = vrsqrt.f32 %v540_v44  ;;  %vm548_vm12 = vweird.f32 %v540_v44 }
 0x64d   :  { %v537_v45 = vpop.xlane.xlu2 %536 }
 0x64e   :  { %v539_v46 = vmul.f32 %v537_v45, %v1977_v10 }
 0x650   :  { %v1771_v47 = vpop.eup %1770  ;;  %v541_v48 = vadd.f32 1e-12, %v539_v46  ;;  %v1720_v46 = vld [vmem:[%s2453_s13] ss:$0 sm:$0xff] }
 0x651   :  { %v543_v51 = vmul.f32 %v1771_v47, %v540_v44  ;;  %vm549_vm11 = vweird.f32 %v1771_v47 }
 0x652   :  { %1772 = vrsqrt.f32 %v541_v48  ;;  %vm550_vm13 = vmor %vm548_vm12, %vm549_vm11  ;;  %vm558_vm15 = vweird.f32 %v541_v48 }
 0x653   :  { %v544_v52 = vmul.f32 %v1771_v47, %v543_v51 }
 0x655   :  { %v545_v53 = vmul.f32 0.5, %v544_v52 }
 0x657   :  { %v546_v54 = vsub.f32 1.5, %v545_v53 }
 0x658   :  { %v1773_v55 = vpop.eup %1772 }
 0x659   :  { %v547_v56 = vmul.f32 %v1771_v47, %v546_v54  ;;  %v553_v58 = vmul.f32 %v1773_v55, %v541_v48  ;;  %vm559_vm14 = vweird.f32 %v1773_v55 }
 0x65a   :  { %vm560_vm1 = vmor %vm558_vm15, %vm559_vm14 }
 0x65b   :  { %v554_v59 = vmul.f32 %v1773_v55, %v553_v58  ;;  %v551_v60 = vsel %vm550_vm13, %v1771_v47, %v547_v56 }
 0x65c   :  { %v562_v0 = vmul.f32 %v551_v60, %v528_v29 }
 0x65d   :  { %v555_v61 = vmul.f32 0.5, %v554_v59 }
 0x65e   :  { %v567_v4 = vmul.f32 %v1717_v63, %v562_v0 }
 0x65f   :  { %v556_v62 = vsub.f32 1.5, %v555_v61 }
 0x660   :  { %v572_v7 = vadd.f32 %v1718_v3, %v567_v4  ;;  %v1655_v4 = vld [vmem:[%s2444_s4 + $0x18] sm:$0xff] }
 0x661   :  { %v557_v1 = vmul.f32 %v1773_v55, %v556_v62  ;;  %775 = vmatpush.bf16.msrb.mxu2 %v1655_v4 }
 0x663   :  { %v561_v2 = vsel %vm560_vm1, %v1773_v55, %v557_v1 }
 0x664   :  { %v563_v5 = vmul.f32 %v561_v2, %v529_v34 }
 0x666   :  { %v568_v6 = vmul.f32 %v1717_v63, %v563_v5 }
 0x668   :  { %v573_v8 = vadd.f32 %v1718_v3, %v568_v6 }
 0x66a   :  { %v578_v9 = vpack.c.bf16 %v573_v8, %v572_v7 }
 0x66c   :  { %1537 = vmatmul.msk.bf16.vlgmr.msra.gmra.mxu1 %vm69_vm0, %v578_v9 }
 0x6e9   :  { %v607_v16 = vpop.f32.mrf.mxu1 }
 0x6ea   :  { %v608_v17 = vadd.f32 %v1719_v15, %v607_v16 }
 0x6ec   :  { %v614_v20 = vmul.f32 0.044715, %v608_v17  ;;  %v612_v50 = vmul.f32 0.5, %v608_v17 }
 0x6ee   :  { %v616_v21 = vmul.f32 %v614_v20, %v608_v17 }
 0x6f0   :  { %v618_v22 = vmul.f32 %v616_v21, %v608_v17 }
 0x6f1   :  { %v609_v57 = vpop.f32.mrf.mxu1 }
 0x6f2   :  { %v620_v23 = vadd.f32 %v618_v22, %v608_v17  ;;  %v610_v24 = vadd.f32 %v1719_v15, %v609_v57 }
 0x6f4   :  { %v615_v25 = vmul.f32 0.044715, %v610_v24  ;;  %v622_v29 = vmul.f32 0.7978846, %v620_v23  ;;  %v613_v39 = vmul.f32 0.5, %v610_v24 }
 0x6f6   :  { %v617_v30 = vmul.f32 %v615_v25, %v610_v24  ;;  %1774 = vtanh.f32 %v622_v29  ;;  %v1721_v29 = vld [vmem:[%s2454_s14] ss:$0 sm:$0xff] }
 0x6f8   :  { %v619_v31 = vmul.f32 %v617_v30, %v610_v24 }
 0x6fa   :  { %v621_v33 = vadd.f32 %v619_v31, %v610_v24 }
 0x6fc   :  { %v623_v49 = vmul.f32 0.7978846, %v621_v33  ;;  %v1775_v34 = vpop.eup %1774 }
 0x6fd   :  { %v626_v35 = vadd.f32 1.0, %v1775_v34 }
 0x6fe   :  { %1776 = vtanh.f32 %v623_v49  ;;  %v1722_v49 = vld [vmem:[%s2455_s15] ss:$0 sm:$0xff] }
 0x6ff   :  { %v628_v43 = vmul.f32 %v626_v35, %v612_v50 }
 0x704   :  { %v1777_v38 = vpop.eup %1776 }
 0x705   :  { %v627_v40 = vadd.f32 1.0, %v1777_v38 }
 0x707   :  { %v629_v44 = vmul.f32 %v627_v40, %v613_v39 }
 0x709   :  { %v638_v45 = vpack.c.bf16 %v629_v44, %v628_v43  ;;  %v1723_v44 = vld [vmem:[%s2445_s5 + $0x1] ss:$0 sm:$0xff]  ;;  %s2483_s5 = smov 104  }
 0x70b   :  { %1554 = vmatmul.msk.bf16.vlgmr.msra.gmra.mxu3 %vm667_vm2, %v638_v45 }
 0x78e   :  { %v680_v47 = vpop.f32.mrf.mxu3 }
 0x78f   :  { %v681_v48 = vadd.f32 %v1720_v46, %v680_v47 }
 0x791   :  { %v685_v51 = vadd.f32 %v681_v48, %v572_v7  ;;  %v1654_v7 = vld [vmem:[%s2444_s4 + $0x10] sm:$0xff] }
 0x792   :  { %776 = vmatpush.bf16.msrb.mxu2 %v1654_v7 }
 0x793   :  { %v689_v52 = vsel %vm69_vm0, %v685_v51, 0.0 }
 0x794   :  { %690 = vadd.xlane.f32.xlu2 %v689_v52 }
 0x796   :  { %v682_v53 = vpop.f32.mrf.mxu3 }
 0x797   :  { %v683_v54 = vadd.f32 %v1720_v46, %v682_v53 }
 0x799   :  { %v686_v55 = vadd.f32 %v683_v54, %v573_v8 }
 0x79b   :  { %v692_v56 = vsel %vm69_vm0, %v686_v55, 0.0 }
 0x79c   :  { %693 = vadd.xlane.f32.xlu2 %v692_v56 }
 0x807   :  { %v691_v58 = vpop.xlane.xlu2 %690 }
 0x808   :  { %v695_v59 = vmul.f32 %v691_v58, %v1977_v10 }
 0x80a   :  { %v697_v60 = vsub.f32 %v685_v51, %v695_v59 }
 0x80c   :  { %v699_v61 = vmul.f32 %v697_v60, %v697_v60 }
 0x80e   :  { %v701_v62 = vsel %vm69_vm0, %v699_v61, 0.0 }
 0x80f   :  { %702 = vadd.xlane.f32.xlu2 %v701_v62  ;;  %v694_v63 = vpop.xlane.xlu2 %693 }
 0x810   :  { %v696_v0 = vmul.f32 %v694_v63, %v1977_v10 }
 0x812   :  { %v698_v1 = vsub.f32 %v686_v55, %v696_v0 }
 0x814   :  { %v700_v2 = vmul.f32 %v698_v1, %v698_v1 }
 0x816   :  { %v704_v3 = vsel %vm69_vm0, %v700_v2, 0.0 }
 0x817   :  { %705 = vadd.xlane.f32.xlu1 %v704_v3 }
 0x882   :  { %v703_v5 = vpop.xlane.xlu2 %702 }
 0x883   :  { %v707_v6 = vmul.f32 %v703_v5, %v1977_v10 }
 0x885   :  { %v709_v8 = vadd.f32 1e-12, %v707_v6 }
 0x887   :  { %1778 = vrsqrt.f32 %v709_v8  ;;  %vm717_vm4 = vweird.f32 %v709_v8 }
 0x88a   :  { %v706_v9 = vpop.xlane.xlu1 %705 }
 0x88b   :  { %v708_v11 = vmul.f32 %v706_v9, %v1977_v10 }
 0x88d   :  { %v1779_v12 = vpop.eup %1778  ;;  %v710_v13 = vadd.f32 1e-12, %v708_v11 }
 0x88e   :  { %v712_v14 = vmul.f32 %v1779_v12, %v709_v8  ;;  %vm718_vm3 = vweird.f32 %v1779_v12 }
 0x88f   :  { %1780 = vrsqrt.f32 %v710_v13  ;;  %vm719_vm5 = vmor %vm717_vm4, %vm718_vm3  ;;  %vm727_vm7 = vweird.f32 %v710_v13 }
 0x890   :  { %v713_v15 = vmul.f32 %v1779_v12, %v712_v14 }
 0x892   :  { %v714_v16 = vmul.f32 0.5, %v713_v15 }
 0x894   :  { %v715_v17 = vsub.f32 1.5, %v714_v16 }
 0x895   :  { %v1781_v20 = vpop.eup %1780 }
 0x896   :  { %v716_v21 = vmul.f32 %v1779_v12, %v715_v17  ;;  %v722_v22 = vmul.f32 %v1781_v20, %v710_v13  ;;  %vm728_vm6 = vweird.f32 %v1781_v20 }
 0x897   :  { %vm729_vm11 = vmor %vm727_vm7, %vm728_vm6 }
 0x898   :  { %v723_v57 = vmul.f32 %v1781_v20, %v722_v22  ;;  %v720_v23 = vsel %vm719_vm5, %v1779_v12, %v716_v21 }
 0x899   :  { %v731_v30 = vmul.f32 %v720_v23, %v697_v60 }
 0x89a   :  { %v724_v24 = vmul.f32 0.5, %v723_v57 }
 0x89b   :  { %v736_v34 = vmul.f32 %v1721_v29, %v731_v30 }
 0x89c   :  { %v725_v25 = vsub.f32 1.5, %v724_v24 }
 0x89d   :  { %v2203_v50 = vadd.f32 %v1722_v49, %v736_v34 }
 0x89e   :  { %v726_v31 = vmul.f32 %v1781_v20, %v725_v25 }
 0x8a0   :  { %v730_v33 = vsel %vm729_vm11, %v1781_v20, %v726_v31  ;;  %vm1366_vm11 = vcmask 1040384  }
 0x8a1   :  { %v732_v35 = vmul.f32 %v730_v33, %v698_v1 }
 0x8a3   :  { %v737_v38 = vmul.f32 %v1721_v29, %v732_v35 }
 0x8a5   :  { %v2205_v39 = vadd.f32 %v1722_v49, %v737_v38 }
 0x8a7   :  { %v748_v40 = vpack.c.bf16 %v2205_v39, %v2203_v50 }
 0x8a9   :  { %1568 = vmatmul.msk.bf16.vlgmr.msrb.gmra.mxu2 %vm69_vm0, %v748_v40 }
 0x92c   :  { %v778_v43 = vpop.f32.mrf.mxu2 }
 0x92d   :  { %v779_v46 = vadd.f32 %v1723_v44, %v778_v43 }
 0x934   :  { %v780_v45 = vpop.f32.mrf.mxu2 }
 0x935   :  { %v781_v47 = vadd.f32 %v1723_v44, %v780_v45 }
 0x937   :  { %v2213_v48 = vpack.c.bf16 %v781_v47, %v779_v46 }
 0x939   :  { %785 = vrot.lane.b32.xlu1 %v2213_v48, %s1855_s1  ;;  %852 = vrot.lane.b32.xlu0 %v2213_v48, %s1854_s21  ;;  %s2486_s21 = smov 56  }
 0x93a   :  { %854 = vrot.lane.b32.xlu2 %v2213_v48, %s1856_s22  ;;  %s2487_s22 = smov 48  }
 0x941   :  { %923 = vrot.lane.b32.xlu1 %v2213_v48, %s1858_s23  ;;  %992 = vrot.lane.b32.xlu0 %v2213_v48, %s1853_s20  ;;  %s2485_s20 = smov 64  }
 0x942   :  { %990 = vrot.lane.b32.xlu2 %v2213_v48, %s2483_s5 }
 0x949   :  { %921 = vrot.lane.b32.xlu0 %v2213_v48, %s2484_s24 }
 0x994   :  { %v855_v51 = vpop.permute.xlu2 %854 }
 0x995   :  { %v860_v52 = vsel %vm173_vm8, %v855_v51, 0 }
 0x996   :  { %869 = vmatpush.bf16.xpose.msrb.mxu3 %v860_v52 }
 0x99c   :  { %v991_v61 = vpop.permute.xlu2 %990 }
 0x9ab   :  { %v786_v53 = vpop.permute.xlu1 %785  ;;  %v853_v54 = vpop.permute.xlu0 %852 }
 0x9ac   :  { %v791_v55 = vsel %vm173_vm8, %v786_v53, 0  ;;  %1571 = vmatmul.msk.bf16.vlgmr.msrb.gmra.mxu3 %vm173_vm8, %v853_v54 }
 0x9ad   :  { %800 = vmatpush.bf16.xpose.msrb.mxu0 %v791_v55 }
 0x9b3   :  { %v924_v56 = vpop.permute.xlu1 %923  ;;  %v993_v58 = vpop.permute.xlu0 %992 }
 0x9b4   :  { %v929_v59 = vsel %vm173_vm8, %v924_v56, 0  ;;  %v998_v60 = vsel %vm173_vm8, %v993_v58, 0  ;;  %1569 = vmatmul.msk.bf16.vlgmr.msrb.gmra.mxu0 %vm173_vm8, %v2213_v48 }
 0x9b5   :  { %938 = vmatpush.bf16.xpose.msra.mxu0 %v929_v59  ;;  %1007 = vmatpush.bf16.xpose.msra.mxu3 %v998_v60 }
 0x9bb   :  { %v922_v62 = vpop.permute.xlu0 %921 }
 0x9bc   :  { %1575 = vmatmul.msk.bf16.vlgmr.msra.gmra.mxu3 %vm173_vm8, %v991_v61 }
 0x9c4   :  { %1573 = vmatmul.msk.bf16.vlgmr.msra.gmra.mxu0 %vm173_vm8, %v922_v62 }
 0xa2f   :  { %v871_v63 = vpop.f32.mrf.mxu3 }
 0xa30   :  { %v876_v0 = vsel %vm194_vm9, %v871_v63, -inf }
 0xa31   :  { %v802_v1 = vpop.f32.mrf.mxu0  ;;  %877 = vmax.xlane.f32.xlu2 %v876_v0 }
 0xa32   :  { %v807_v2 = vsel %vm194_vm9, %v802_v1, -inf }
 0xa33   :  { %808 = vmax.xlane.f32.xlu0 %v807_v2 }
 0xa37   :  { %v873_v3 = vpop.f32.mrf.mxu3 }
 0xa38   :  { %v879_v4 = vsel %vm194_vm9, %v873_v3, -inf }
 0xa39   :  { %v804_v5 = vpop.f32.mrf.mxu0  ;;  %880 = vmax.xlane.f32.xlu1 %v879_v4 }
 0xa3a   :  { %v810_v6 = vsel %vm194_vm9, %v804_v5, -inf }
 0xa3b   :  { %811 = vmax.xlane.f32.xlu2 %v810_v6 }
 0xa3f   :  { %v1009_v7 = vpop.f32.mrf.mxu3 }
 0xa40   :  { %v1014_v8 = vsel %vm194_vm9, %v1009_v7, -inf }
 0xa41   :  { %v940_v9 = vpop.f32.mrf.mxu0  ;;  %1015 = vmax.xlane.f32.xlu1 %v1014_v8 }
 0xa42   :  { %v945_v11 = vsel %vm194_vm9, %v940_v9, -inf }
 0xa43   :  { %946 = vmax.xlane.f32.xlu2 %v945_v11 }
 0xa47   :  { %v1011_v12 = vpop.f32.mrf.mxu3 }
 0xa48   :  { %v1017_v13 = vsel %vm194_vm9, %v1011_v12, -inf }
 0xa49   :  { %v2245_v14 = vpop.f32.mrf.mxu0  ;;  %1018 = vmax.xlane.f32.xlu0 %v1017_v13 }
 0xa4a   :  { %v948_v15 = vsel %vm194_vm9, %v2245_v14, -inf }
 0xa4b   :  { %949 = vmax.xlane.f32.xlu1 %v948_v15 }
 0xaa4   :  { %v878_v16 = vpop.xlane.xlu2 %877 }
 0xaa5   :  { %v882_v17 = vsub.f32 %v871_v63, %v878_v16 }
 0xaa6   :  { %v809_v20 = vpop.xlane.xlu0 %808 }
 0xaa7   :  { %v884_v21 = vmul.f32 1.442695, %v882_v17  ;;  %v813_v22 = vsub.f32 %v802_v1, %v809_v20 }
 0xaa9   :  { %1782 = vpow2.f32 %v884_v21  ;;  %v815_v57 = vmul.f32 1.442695, %v813_v22 }
 0xaab   :  { %1784 = vpow2.f32 %v815_v57 }
 0xaac   :  { %v881_v23 = vpop.xlane.xlu1 %880 }
 0xaad   :  { %v883_v24 = vsub.f32 %v873_v3, %v881_v23 }
 0xaae   :  { %v812_v25 = vpop.xlane.xlu2 %811 }
 0xaaf   :  { %v1783_v29 = vpop.eup %1782  ;;  %v886_v30 = vmul.f32 1.442695, %v883_v24  ;;  %v814_v31 = vsub.f32 %v804_v5, %v812_v25 }
 0xab0   :  { %v2250_v33 = vmul.f32 %v1783_v29, %v2050_v27 }
 0xab1   :  { %v1785_v49 = vpop.eup %1784  ;;  %1786 = vpow2.f32 %v886_v30  ;;  %v817_v34 = vmul.f32 1.442695, %v814_v31 }
 0xab2   :  { %v890_v35 = vsel %vm194_vm9, %v2250_v33, 0.0  ;;  %v2255_v38 = vmul.f32 %v1785_v49, %v2050_v27 }
 0xab3   :  { %1788 = vpow2.f32 %v817_v34  ;;  %891 = vadd.xlane.f32.xlu0 %v890_v35 }
 0xab4   :  { %v1016_v40 = vpop.xlane.xlu1 %1015  ;;  %v821_v43 = vsel %vm194_vm9, %v2255_v38, 0.0 }
 0xab5   :  { %822 = vadd.xlane.f32.xlu1 %v821_v43  ;;  %v1020_v46 = vsub.f32 %v1009_v7, %v1016_v40 }
 0xab6   :  { %v947_v44 = vpop.xlane.xlu2 %946 }
 0xab7   :  { %v1787_v45 = vpop.eup %1786  ;;  %v951_v47 = vsub.f32 %v940_v9, %v947_v44  ;;  %v1022_v56 = vmul.f32 1.442695, %v1020_v46 }
 0xab8   :  { %v889_v51 = vmul.f32 %v1787_v45, %v2060_v32 }
 0xab9   :  { %v1789_v52 = vpop.eup %1788  ;;  %v953_v53 = vmul.f32 1.442695, %v951_v47 }
 0xaba   :  { %v893_v54 = vsel %vm194_vm9, %v889_v51, 0.0  ;;  %v820_v55 = vmul.f32 %v1789_v52, %v2060_v32 }
 0xabb   :  { %1790 = vpow2.f32 %v953_v53  ;;  %894 = vadd.xlane.f32.xlu2 %v893_v54 }
 0xabc   :  { %v1019_v58 = vpop.xlane.xlu0 %1018  ;;  %v824_v59 = vsel %vm194_vm9, %v820_v55, 0.0  ;;  %1792 = vpow2.f32 %v1022_v56 }
 0xabd   :  { %825 = vadd.xlane.f32.xlu0 %v824_v59  ;;  %v1021_v60 = vsub.f32 %v1011_v12, %v1019_v58 }
 0xabe   :  { %v950_v7 = vpop.xlane.xlu1 %949 }
 0xabf   :  { %v1024_v63 = vmul.f32 1.442695, %v1021_v60 }
 0xac1   :  { %v1791_v61 = vpop.eup %1790  ;;  %1794 = vpow2.f32 %v1024_v63 }
 0xac2   :  { %v2264_v62 = vmul.f32 %v1791_v61, %v2050_v27  ;;  %v1793_v1 = vpop.eup %1792 }
 0xac3   :  { %v1026_v2 = vmul.f32 %v1793_v1, %v2050_v27  ;;  %v952_v27 = vsub.f32 %v2245_v14, %v950_v7 }
 0xac4   :  { %v959_v0 = vsel %vm194_vm9, %v2264_v62, 0.0 }
 0xac5   :  { %960 = vadd.xlane.f32.xlu0 %v959_v0  ;;  %v1028_v3 = vsel %vm194_vm9, %v1026_v2, 0.0  ;;  %v955_v8 = vmul.f32 1.442695, %v952_v27 }
 0xac7   :  { %v1795_v4 = vpop.eup %1794  ;;  %1796 = vpow2.f32 %v955_v8 }
 0xac8   :  { %v1027_v5 = vmul.f32 %v1795_v4, %v2060_v32  ;;  %v1656_v4 = vld [vmem:[%s2446_s6 + $0x10] sm:$0xff] }
 0xaca   :  { %v1031_v6 = vsel %vm194_vm9, %v1027_v5, 0.0 }
 0xacd   :  { %1029 = vadd.xlane.f32.xlu0 %v1028_v3  ;;  %v1797_v9 = vpop.eup %1796  ;;  %v1657_v3 = vld [vmem:[%s2446_s6 + $0x18] sm:$0xff] }
 0xace   :  { %832 = vrot.lane.b32.xlu1 %v2213_v48, %s2485_s20  ;;  %v958_v11 = vmul.f32 %v1797_v9, %v2060_v32  ;;  %1121 = vmatpush.bf16.msrb.mxu0 %v1657_v3 }
 0xad0   :  { %v962_v12 = vsel %vm194_vm9, %v958_v11, 0.0 }
 0xad2   :  { %1122 = vmatpush.bf16.msrb.mxu0 %v1656_v4 }
 0xad3   :  { %901 = vrot.lane.b32.xlu2 %v2213_v48, %s2486_s21 }
 0xad5   :  { %1032 = vadd.xlane.f32.xlu0 %v1031_v6 }
 0xad6   :  { %970 = vrot.lane.b32.xlu1 %v2213_v48, %s2487_s22 }
 0xae9   :  { %1039 = vrot.lane.b32.xlu0 %v2213_v48, %s2488_s25 }
 0xafc   :  { %963 = vadd.xlane.f32.xlu2 %v962_v12 }
 0xb26   :  { %v892_v13 = vpop.xlane.xlu0 %891 }
 0xb27   :  { %1798 = vrcp.f32 %v892_v13 }
 0xb28   :  { %v823_v20 = vpop.xlane.xlu1 %822 }
 0xb2d   :  { %v1799_v17 = vpop.eup %1798 }
 0xb2e   :  { %v895_v15 = vpop.xlane.xlu2 %894  ;;  %v2284_v14 = vmul.f32 %v1799_v17, %v2250_v33 }
 0xb2f   :  { %1800 = vrcp.f32 %v895_v15 }
 0xb30   :  { %v826_v16 = vpop.xlane.xlu0 %825 }
 0xb31   :  { %1802 = vrcp.f32 %v826_v16 }
 0xb32   :  { %1804 = vrcp.f32 %v823_v20 }
 0xb35   :  { %v1801_v21 = vpop.eup %1800 }
 0xb36   :  { %v2286_v48 = vmul.f32 %v1801_v21, %v889_v51  ;;  %v902_v22 = vpop.permute.xlu2 %901 }
 0xb37   :  { %914 = vmatpush.bf16.msra.mxu2 %v902_v22  ;;  %v1803_v23 = vpop.eup %1802 }
 0xb38   :  { %v900_v32 = vpack.c.bf16 %v2286_v48, %v2284_v14  ;;  %v961_v57 = vpop.xlane.xlu0 %960  ;;  %v1805_v24 = vpop.eup %1804  ;;  %v2291_v25 = vmul.f32 %v1803_v23, %v820_v55 }
 0xb39   :  { %v2294_v29 = vmul.f32 %v1805_v24, %v2255_v38 }
 0xb3a   :  { %1572 = vmatmul.msk.bf16.vlgmr.msra.gmra.mxu2 %vm194_vm9, %v900_v32 }
 0xb3b   :  { %v831_v31 = vpack.c.bf16 %v2291_v25, %v2294_v29 }
 0xb40   :  { %v833_v30 = vpop.permute.xlu1 %832  ;;  %v1030_v33 = vpop.xlane.xlu0 %1029 }
 0xb41   :  { %845 = vmatpush.bf16.msrb.mxu1 %v833_v30 }
 0xb44   :  { %1570 = vmatmul.msk.bf16.vlgmr.msrb.gmra.mxu1 %vm194_vm9, %v831_v31 }
 0xb48   :  { %v971_v49 = vpop.permute.xlu1 %970  ;;  %v1033_v34 = vpop.xlane.xlu0 %1032 }
 0xb49   :  { %983 = vmatpush.bf16.msra.mxu1 %v971_v49  ;;  %1806 = vrcp.f32 %v1033_v34 }
 0xb4a   :  { %1808 = vrcp.f32 %v1030_v33 }
 0xb4b   :  { %1810 = vrcp.f32 %v961_v57  ;;  %v1724_v57 = vld [vmem:[%s2447_s7 + $0x1] ss:$0 sm:$0xff] }
 0xb4f   :  { %v1807_v35 = vpop.eup %1806 }
 0xb50   :  { %v1809_v40 = vpop.eup %1808  ;;  %v2299_v43 = vmul.f32 %v1807_v35, %v1027_v5 }
 0xb51   :  { %v2301_v44 = vmul.f32 %v1809_v40, %v1026_v2  ;;  %v1811_v47 = vpop.eup %1810 }
 0xb52   :  { %v967_v52 = vmul.f32 %v1811_v47, %v2264_v62 }
 0xb53   :  { %v1038_v45 = vpack.c.bf16 %v2299_v43, %v2301_v44 }
 0xb5b   :  { %v1040_v38 = vpop.permute.xlu0 %1039 }
 0xb5c   :  { %1052 = vmatpush.bf16.msrb.mxu2 %v1040_v38 }
 0xb5f   :  { %1576 = vmatmul.msk.bf16.vlgmr.msrb.gmra.mxu2 %vm194_vm9, %v1038_v45 }
 0xb6f   :  { %v964_v46 = vpop.xlane.xlu2 %963 }
 0xb70   :  { %1812 = vrcp.f32 %v964_v46 }
 0xb76   :  { %v1813_v51 = vpop.eup %1812 }
 0xb77   :  { %v2307_v53 = vmul.f32 %v1813_v51, %v958_v11 }
 0xb79   :  { %v969_v54 = vpack.c.bf16 %v2307_v53, %v967_v52 }
 0xb7b   :  { %1574 = vmatmul.msk.bf16.vlgmr.msra.gmra.mxu1 %vm194_vm9, %v969_v54  ;;  %v1658_v54 = vld [vmem:[%s2450_s10 + $0x10] sm:$0xff] }
 0xbbd   :  { %v916_v55 = vpop.f32.mrf.mxu2 }
 0xbc1   :  { %v847_v60 = vpop.f32.mrf.mxu1 }
 0xbc5   :  { %v918_v56 = vpop.f32.mrf.mxu2 }
 0xbc6   :  { %v1698_v58 = vpack.i.bf16 %v918_v56, %v916_v55 }
 0xbc8   :  { %1699 = vrot.lane.b32.xlu1 %v1698_v58, %s2489_s27 }
 0xbc9   :  { %v849_v0 = vpop.f32.mrf.mxu1 }
 0xbe2   :  { %v1054_v59 = vpop.f32.mrf.mxu2 }
 0xbea   :  { %v1056_v61 = vpop.f32.mrf.mxu2 }
 0xbeb   :  { %v1708_v63 = vpack.i.bf16 %v1056_v61, %v1054_v59 }
 0xbed   :  { %1709 = vrot.lane.b32.xlu0 %v1708_v63, %s2490_s28  ;;  %s1868_s28 = smov [#allocation2]  }
 0xbee   :  { %s1488_s4 = sshll.u32 %s1868_s28, 4  ;;  %s1489_s4 = int_to_ptr.vmem [resolvable:$true] %s1488_s4 }
 0xbf8   :  { %v985_v1 = vpop.f32.mrf.mxu1 }
 0xc00   :  { %v987_v62 = vpop.f32.mrf.mxu1 }
 0xc01   :  { %v1703_v2 = vpack.i.bf16 %v987_v62, %v985_v1 }
 0xc03   :  { %1704 = vrot.lane.b32.xlu1 %v1703_v2, %s2491_s29 }
 0xc3a   :  { %v1700_v5 = vpop.permute.xlu1 %1699 }
 0xc3b   :  { %v1702_v6 = vunpack.i.h.bf16 %v1700_v5  ;;  %v1701_v7 = vunpack.i.l.bf16 %v1700_v5 }
 0xc3d   :  { %v1084_v12 = vsel %vm173_vm8, %v849_v0, %v1702_v6  ;;  %v1083_v13 = vsel %vm173_vm8, %v847_v60, %v1701_v7  ;;  %v1725_v7 = vld [vmem:[%s2448_s8 + $0x1] ss:$0 sm:$0xff]  ;;  %s1490_s8 = sshll.u32 %s2458_s18, 4  ;;  %s1491_s8 = int_to_ptr.hbm [resolvable:$true] %s1490_s8 }
 0xc5f   :  { %v1710_v27 = vpop.permute.xlu0 %1709 }
 0xc60   :  { %v1712_v15 = vunpack.i.h.bf16 %v1710_v27  ;;  %v1711_v16 = vunpack.i.l.bf16 %v1710_v27 }
 0xc75   :  { %v1705_v8 = vpop.permute.xlu1 %1704 }
 0xc76   :  { %v1707_v9 = vunpack.i.h.bf16 %v1705_v8  ;;  %v1706_v11 = vunpack.i.l.bf16 %v1705_v8 }
 0xc78   :  { %v1086_v17 = vsel %vm194_vm9, %v1084_v12, %v1707_v9  ;;  %v1085_v20 = vsel %vm194_vm9, %v1083_v13, %v1706_v11  ;;  %v1726_v11 = vld [vmem:[%s2449_s9 + $0x1] ss:$0 sm:$0xff] }
 0xc79   :  { %v1088_v21 = vsel %vm475_vm10, %v1086_v17, %v1712_v15  ;;  %v1087_v22 = vsel %vm475_vm10, %v1085_v20, %v1711_v16 }
 0xc7a   :  { %v1094_v32 = vpack.c.bf16 %v1088_v21, %v1087_v22  ;;  %v1663_v21 = vld [vmem:[%s2452_s12 + $0x38] sm:$0xff]  ;;  %v1662_v22 = vld [vmem:[%s2452_s12 + $0x30] sm:$0xff] }
 0xc7b   :  { %1293 = vmatpush.bf16.msrb.mxu3 %v1663_v21 }
 0xc7c   :  { %1590 = vmatmul.msk.bf16.vlgmr.msrb.gmra.mxu0 %vm69_vm0, %v1094_v32  ;;  %v1661_v32 = vld [vmem:[%s2452_s12 + $0x28] sm:$0xff] }
 0xc7f   :  { %1294 = vmatpush.bf16.msrb.mxu3 %v1662_v22 }
 0xc83   :  { %1295 = vmatpush.bf16.msrb.mxu3 %v1661_v32 }
 0xcf9   :  { %v1124_v23 = vpop.f32.mrf.mxu0 }
 0xcfa   :  { %v1125_v24 = vadd.f32 %v1724_v57, %v1124_v23  ;;  %v1727_v23 = vld [vmem:[%s2451_s11 + $0x1] ss:$0 sm:$0xff] }
 0xcfc   :  { %v1129_v30 = vadd.f32 %v1125_v24, %v2203_v50 }
 0xcfe   :  { %v1135_v31 = vsel %vm69_vm0, %v1129_v30, 0.0 }
 0xcff   :  { %1136 = vadd.xlane.f32.xlu1 %v1135_v31 }
 0xd01   :  { %v1126_v33 = vpop.f32.mrf.mxu0 }
 0xd02   :  { %v1127_v49 = vadd.f32 %v1724_v57, %v1126_v33  ;;  %v1660_v57 = vld [vmem:[%s2452_s12 + $0x20] sm:$0xff] }
 0xd03   :  { %1296 = vmatpush.bf16.msrb.mxu3 %v1660_v57 }
 0xd04   :  { %v1130_v34 = vadd.f32 %v1127_v49, %v2205_v39 }
 0xd06   :  { %v1138_v35 = vsel %vm69_vm0, %v1130_v34, 0.0 }
 0xd07   :  { %1139 = vadd.xlane.f32.xlu0 %v1138_v35 }
 0xd1b   :  { %1409 = vrot.lane.b32.xlu0 %v2100_v26, %s2491_s29 }
 0xd23   :  { %1419 = vrot.lane.b32.xlu0 %v2117_v42, %s1867_s2 }
 0xd2b   :  { %1425 = vrot.lane.b32.xlu0 %v2107_v36, %s2487_s22 }
 0xd33   :  { %1435 = vrot.lane.b32.xlu0 %v2291_v25, %s2485_s20 }
 0xd3b   :  { %1449 = vrot.lane.b32.xlu0 %v967_v52, %s1855_s1 }
 0xd43   :  { %1459 = vrot.lane.b32.xlu0 %v2299_v43, %s2484_s24  ;;  %v1659_v43 = vld [vmem:[%s2450_s10 + $0x18] sm:$0xff] }
 0xd44   :  { %1221 = vmatpush.bf16.msrb.mxu1 %v1659_v43 }
 0xd48   :  { %1222 = vmatpush.bf16.msrb.mxu1 %v1658_v54 }
 0xd72   :  { %v1137_v50 = vpop.xlane.xlu1 %1136 }
 0xd73   :  { %v1141_v39 = vmul.f32 %v1137_v50, %v1977_v10 }
 0xd75   :  { %v1143_v40 = vsub.f32 %v1129_v30, %v1141_v39 }
 0xd77   :  { %v1145_v26 = vmul.f32 %v1143_v40, %v1143_v40 }
 0xd79   :  { %v1147_v38 = vsel %vm69_vm0, %v1145_v26, 0.0 }
 0xd7a   :  { %v1140_v45 = vpop.xlane.xlu0 %1139  ;;  %1148 = vadd.xlane.f32.xlu2 %v1147_v38 }
 0xd7b   :  { %v1142_v42 = vmul.f32 %v1140_v45, %v1977_v10 }
 0xd7d   :  { %v1144_v36 = vsub.f32 %v1130_v34, %v1142_v42 }
 0xd7f   :  { %v1146_v46 = vmul.f32 %v1144_v36, %v1144_v36 }
 0xd81   :  { %v1150_v25 = vsel %vm69_vm0, %v1146_v46, 0.0 }
 0xd82   :  { %1151 = vadd.xlane.f32.xlu2 %v1150_v25 }
 0xded   :  { %v1149_v47 = vpop.xlane.xlu2 %1148 }
 0xdee   :  { %v1153_v51 = vmul.f32 %v1149_v47, %v1977_v10 }
 0xdf0   :  { %v1155_v52 = vadd.f32 1e-12, %v1153_v51 }
 0xdf2   :  { %1814 = vrsqrt.f32 %v1155_v52  ;;  %vm1163_vm10 = vweird.f32 %v1155_v52 }
 0xdf5   :  { %v1152_v55 = vpop.xlane.xlu2 %1151 }
 0xdf6   :  { %v1154_v56 = vmul.f32 %v1152_v55, %v1977_v10 }
 0xdf8   :  { %v1815_v58 = vpop.eup %1814  ;;  %v1156_v59 = vadd.f32 1e-12, %v1154_v56 }
 0xdf9   :  { %v1158_v60 = vmul.f32 %v1815_v58, %v1155_v52  ;;  %vm1164_vm8 = vweird.f32 %v1815_v58 }
 0xdfa   :  { %1816 = vrsqrt.f32 %v1156_v59  ;;  %vm1165_vm12 = vmor %vm1163_vm10, %vm1164_vm8  ;;  %vm1173_vm14 = vweird.f32 %v1156_v59  ;;  %vm1467_vm8 = vcmask 392192   ;;  %vm1472_vm10 = vcmask 654336  }
 0xdfb   :  { %v1159_v61 = vmul.f32 %v1815_v58, %v1158_v60 }
 0xdfd   :  { %v1160_v63 = vmul.f32 0.5, %v1159_v61 }
 0xdff   :  { %v1161_v0 = vsub.f32 1.5, %v1160_v63 }
 0xe00   :  { %v1817_v1 = vpop.eup %1816 }
 0xe01   :  { %v1162_v62 = vmul.f32 %v1815_v58, %v1161_v0  ;;  %v1168_v2 = vmul.f32 %v1817_v1, %v1156_v59  ;;  %vm1174_vm13 = vweird.f32 %v1817_v1 }
 0xe02   :  { %vm1175_vm15 = vmor %vm1173_vm14, %vm1174_vm13  ;;  %vm1475_vm13 = vcmask 785408  }
 0xe03   :  { %v1169_v3 = vmul.f32 %v1817_v1, %v1168_v2  ;;  %v1166_v4 = vsel %vm1165_vm12, %v1815_v58, %v1162_v62  ;;  %v1728_v58 = vld [vmem:[%s2453_s13 + $0x1] ss:$0 sm:$0xff]  ;;  %vm1478_vm12 = vcmask 916480  }
 0xe04   :  { %v1177_v27 = vmul.f32 %v1166_v4, %v1143_v40 }
 0xe05   :  { %v1170_v5 = vmul.f32 0.5, %v1169_v3 }
 0xe06   :  { %v1182_v12 = vmul.f32 %v1725_v7, %v1177_v27 }
 0xe07   :  { %v1171_v6 = vsub.f32 1.5, %v1170_v5 }
 0xe08   :  { %v1187_v16 = vadd.f32 %v1726_v11, %v1182_v12 }
 0xe09   :  { %v1172_v8 = vmul.f32 %v1817_v1, %v1171_v6 }
 0xe0b   :  { %v1176_v9 = vsel %vm1175_vm15, %v1817_v1, %v1172_v8 }
 0xe0c   :  { %v1178_v13 = vmul.f32 %v1176_v9, %v1144_v36 }
 0xe0e   :  { %v1183_v15 = vmul.f32 %v1725_v7, %v1178_v13 }
 0xe10   :  { %v1188_v17 = vadd.f32 %v1726_v11, %v1183_v15 }
 0xe12   :  { %v1194_v20 = vpack.c.bf16 %v1188_v17, %v1187_v16 }
 0xe14   :  { %1606 = vmatmul.msk.bf16.vlgmr.msrb.gmra.mxu1 %vm69_vm0, %v1194_v20 }
 0xe91   :  { %v1224_v24 = vpop.f32.mrf.mxu1 }
 0xe92   :  { %v1225_v30 = vadd.f32 %v1727_v23, %v1224_v24 }
 0xe94   :  { %v1231_v31 = vmul.f32 0.044715, %v1225_v30  ;;  %v1229_v43 = vmul.f32 0.5, %v1225_v30 }
 0xe96   :  { %v1233_v33 = vmul.f32 %v1231_v31, %v1225_v30 }
 0xe98   :  { %v1235_v49 = vmul.f32 %v1233_v33, %v1225_v30 }
 0xe99   :  { %v1226_v34 = vpop.f32.mrf.mxu1 }
 0xe9a   :  { %v1237_v35 = vadd.f32 %v1235_v49, %v1225_v30  ;;  %v1227_v50 = vadd.f32 %v1727_v23, %v1226_v34 }
 0xe9c   :  { %v1232_v39 = vmul.f32 0.044715, %v1227_v50  ;;  %v1239_v40 = vmul.f32 0.7978846, %v1237_v35  ;;  %v1230_v47 = vmul.f32 0.5, %v1227_v50 }
 0xe9e   :  { %v1234_v26 = vmul.f32 %v1232_v39, %v1227_v50  ;;  %1818 = vtanh.f32 %v1239_v40  ;;  %v1730_v40 = vld [vmem:[%s2455_s15 + $0x1] ss:$0 sm:$0xff] }
 0xea0   :  { %v1236_v38 = vmul.f32 %v1234_v26, %v1227_v50 }
 0xea2   :  { %v1238_v45 = vadd.f32 %v1236_v38, %v1227_v50 }
 0xea4   :  { %v1240_v42 = vmul.f32 0.7978846, %v1238_v45  ;;  %v1819_v36 = vpop.eup %1818 }
 0xea5   :  { %v1243_v46 = vadd.f32 1.0, %v1819_v36 }
 0xea6   :  { %1820 = vtanh.f32 %v1240_v42 }
 0xea7   :  { %v1245_v52 = vmul.f32 %v1243_v46, %v1229_v43 }
 0xeac   :  { %v1821_v25 = vpop.eup %1820 }
 0xead   :  { %v1244_v51 = vadd.f32 1.0, %v1821_v25 }
 0xeaf   :  { %v1246_v54 = vmul.f32 %v1244_v51, %v1230_v47 }
 0xeb1   :  { %v1256_v55 = vpack.c.bf16 %v1246_v54, %v1245_v52 }
 0xeb3   :  { %1632 = vmatmul.msk.bf16.vlgmr.msrb.gmra.mxu3 %vm667_vm2, %v1256_v55 }
 0xf36   :  { %v1298_v56 = vpop.f32.mrf.mxu3 }
 0xf37   :  { %v1299_v63 = vadd.f32 %v1728_v58, %v1298_v56 }
 0xf39   :  { %v1303_v1 = vadd.f32 %v1299_v63, %v1187_v16 }
 0xf3b   :  { %v1309_v62 = vsel %vm69_vm0, %v1303_v1, 0.0 }
 0xf3e   :  { %v1300_v59 = vpop.f32.mrf.mxu3 }
 0xf3f   :  { %v1301_v60 = vadd.f32 %v1728_v58, %v1300_v59 }
 0xf41   :  { %v1304_v61 = vadd.f32 %v1301_v60, %v1188_v17 }
 0xf43   :  { %v1312_v0 = vsel %vm69_vm0, %v1304_v61, 0.0 }
 0xf44   :  { %1313 = vadd.xlane.f32.xlu2 %v1312_v0 }
 0xf4c   :  { %1310 = vadd.xlane.f32.xlu2 %v1309_v62 }
 0xfb7   :  { %v1314_v2 = vpop.xlane.xlu2 %1313 }
 0xfb8   :  { %v1316_v3 = vmul.f32 %v1314_v2, %v1977_v10 }
 0xfba   :  { %v1318_v4 = vsub.f32 %v1304_v61, %v1316_v3 }
 0xfbc   :  { %v1320_v5 = vmul.f32 %v1318_v4, %v1318_v4 }
 0xfbe   :  { %v1324_v6 = vsel %vm69_vm0, %v1320_v5, 0.0 }
 0xfbf   :  { %1325 = vadd.xlane.f32.xlu1 %v1324_v6  ;;  %v1311_v7 = vpop.xlane.xlu2 %1310 }
 0xfc0   :  { %v1315_v27 = vmul.f32 %v1311_v7, %v1977_v10 }
 0xfc2   :  { %v1317_v8 = vsub.f32 %v1303_v1, %v1315_v27 }
 0xfc4   :  { %v1319_v9 = vmul.f32 %v1317_v8, %v1317_v8 }
 0xfc6   :  { %v1321_v11 = vsel %vm69_vm0, %v1319_v9, 0.0 }
 0xfc7   :  { %1322 = vadd.xlane.f32.xlu2 %v1321_v11 }
 0xfd8   :  { %1411 = vrot.lane.b32.xlu1 %v2102_v28, %s2491_s29  ;;  %v1410_v28 = vpop.permute.xlu0 %1409 }
 0xfd9   :  { %v1463_v56 = vsel %vm194_vm9, %v2091_v18, %v1410_v28 }
 0xfdf   :  { %1417 = vrot.lane.b32.xlu2 %v2114_v41, %s1867_s2 }
 0xfe0   :  { %1433 = vrot.lane.b32.xlu1 %v2294_v29, %s2485_s20  ;;  %v1665_v29 = vld [vmem:[%s2456_s16 + $0x8] sm:$0xff]  ;;  %v1420_v12 = vpop.permute.xlu0 %1419 }
 0xfe1   :  { %1398 = vmatpush.bf16.msra.mxu2 %v1665_v29 }
 0xfe7   :  { %1427 = vrot.lane.b32.xlu2 %v2109_v37, %s2487_s22 }
 0xfe8   :  { %1443 = vrot.lane.b32.xlu1 %v2286_v48, %s1858_s23  ;;  %v1426_v15 = vpop.permute.xlu0 %1425 }
 0xfef   :  { %1441 = vrot.lane.b32.xlu2 %v2284_v14, %s1858_s23  ;;  %v1664_v14 = vld [vmem:[%s2456_s16] sm:$0xff] }
 0xff0   :  { %1457 = vrot.lane.b32.xlu1 %v2301_v44, %s2484_s24  ;;  %1399 = vmatpush.bf16.msra.mxu2 %v1664_v14  ;;  %v1436_v30 = vpop.permute.xlu0 %1435 }
 0xff7   :  { %1451 = vrot.lane.b32.xlu2 %v2307_v53, %s1855_s1 }
 0xff8   :  { %v1450_v42 = vpop.permute.xlu0 %1449 }
0x1000   :  { %v1460_v2 = vpop.permute.xlu0 %1459 }
0x1032   :  { %v1326_v41 = vpop.xlane.xlu1 %1325 }
0x1033   :  { %v1328_v37 = vmul.f32 %v1326_v41, %v1977_v10 }
0x1035   :  { %v1330_v48 = vadd.f32 1e-12, %v1328_v37 }
0x1037   :  { %1822 = vrsqrt.f32 %v1330_v48  ;;  %vm1347_vm3 = vweird.f32 %v1330_v48 }
0x103a   :  { %v1323_v44 = vpop.xlane.xlu2 %1322 }
0x103b   :  { %v1327_v53 = vmul.f32 %v1323_v44, %v1977_v10  ;;  %v1729_v10 = vld [vmem:[%s2454_s14 + $0x1] ss:$0 sm:$0xff] }
0x103d   :  { %v1823_v13 = vpop.eup %1822  ;;  %v1329_v16 = vadd.f32 1e-12, %v1327_v53 }
0x103e   :  { %v1342_v17 = vmul.f32 %v1823_v13, %v1330_v48  ;;  %vm1348_vm1 = vweird.f32 %v1823_v13 }
0x103f   :  { %1824 = vrsqrt.f32 %v1329_v16  ;;  %vm1349_vm4 = vmor %vm1347_vm3, %vm1348_vm1  ;;  %vm1337_vm6 = vweird.f32 %v1329_v16 }
0x1040   :  { %v1343_v20 = vmul.f32 %v1823_v13, %v1342_v17 }
0x1042   :  { %v1344_v21 = vmul.f32 0.5, %v1343_v20  ;;  %v1418_v22 = vpop.permute.xlu2 %1417 }
0x1043   :  { %v1465_v60 = vsel %vm69_vm0, %v1463_v56, %v1418_v22 }
0x1044   :  { %v1345_v32 = vsub.f32 1.5, %v1344_v21  ;;  %v1468_v1 = vsel %vm1467_vm8, %v1465_v60, %v1426_v15 }
0x1045   :  { %v1825_v57 = vpop.eup %1824 }
0x1046   :  { %v1346_v23 = vmul.f32 %v1823_v13, %v1345_v32  ;;  %v1332_v24 = vmul.f32 %v1825_v57, %v1329_v16  ;;  %vm1338_vm5 = vweird.f32 %v1825_v57 }
0x1047   :  { %vm1339_vm7 = vmor %vm1337_vm6, %vm1338_vm5 }
0x1048   :  { %v1350_v31 = vsel %vm1349_vm4, %v1823_v13, %v1346_v23  ;;  %v1333_v33 = vmul.f32 %v1825_v57, %v1332_v24 }
0x1049   :  { %v1352_v49 = vmul.f32 %v1350_v31, %v1318_v4 }
0x104a   :  { %v1334_v34 = vmul.f32 0.5, %v1333_v33  ;;  %v1412_v35 = vpop.permute.xlu1 %1411  ;;  %v1428_v50 = vpop.permute.xlu2 %1427 }
0x104b   :  { %v1357_v26 = vmul.f32 %v1729_v10, %v1352_v49  ;;  %v1464_v25 = vsel %vm194_vm9, %v2094_v19, %v1412_v35 }
0x104c   :  { %v1335_v39 = vsub.f32 1.5, %v1334_v34  ;;  %v1466_v52 = vsel %vm69_vm0, %v1464_v25, %v1420_v12 }
0x104d   :  { %v1362_v36 = vadd.f32 %v1730_v40, %v1357_v26  ;;  %v1469_v58 = vsel %vm1467_vm8, %v1466_v52, %v1428_v50 }
0x104e   :  { %v1336_v38 = vmul.f32 %v1825_v57, %v1335_v39  ;;  %v1471_v19 = vsel %vm667_vm2, %v1469_v58, %v1436_v30 }
0x104f   :  { %v1364_v54 = vrot.slane %v1362_v36, 7 }
0x1050   :  { %v1340_v45 = vsel %vm1339_vm7, %v1825_v57, %v1336_v38 }
0x1051   :  { %v1351_v46 = vmul.f32 %v1340_v45, %v1317_v8  ;;  %v1731_v8 = vld [vmem:[%s2457_s17] ss:$0 sm:$0xff] }
0x1052   :  { %v1434_v43 = vpop.permute.xlu1 %1433  ;;  %v1442_v47 = vpop.permute.xlu2 %1441 }
0x1053   :  { %v1356_v51 = vmul.f32 %v1729_v10, %v1351_v46  ;;  %v1470_v3 = vsel %vm667_vm2, %v1468_v1, %v1434_v43 }
0x1054   :  { %v1473_v5 = vsel %vm1472_vm10, %v1470_v3, %v1442_v47 }
0x1055   :  { %v1361_v55 = vadd.f32 %v1730_v40, %v1356_v51  ;;  %v1476_v7 = vsel %vm1475_vm13, %v1473_v5, %v1450_v42 }
0x1057   :  { %v1367_v59 = vsel %vm1366_vm11, %v1361_v55, %v1364_v54 }
0x1058   :  { %v1372_v61 = vpack.c.bf16 %v1367_v59, %v1367_v59 }
0x105a   :  { %v1444_v63 = vpop.permute.xlu1 %1443  ;;  %1643 = vmatmul.msk.bf16.vlgmr.msra.gmra.mxu2 %vm69_vm0, %v1372_v61  ;;  %v1452_v0 = vpop.permute.xlu2 %1451  ;;  %vm1405_vm0 = vcmask 58368  }
0x105b   :  { %v1474_v62 = vsel %vm1472_vm10, %v1471_v19, %v1444_v63 }
0x105c   :  { %v1477_v18 = vsel %vm1475_vm13, %v1474_v62, %v1452_v0 }
0x105d   :  { %v1480_v4 = vsel %vm1478_vm12, %v1477_v18, %v1460_v2 }
0x105e   :  { %1482 = vst [vmem:[%s2459_s19 + $0x8] sm:$0xff] %v1480_v4 }
0x1062   :  { %v1458_v6 = vpop.permute.xlu1 %1457 }
0x1063   :  { %v1479_v27 = vsel %vm1478_vm12, %v1476_v7, %v1458_v6 }
0x1064   :  { %1481 = vst [vmem:[%s2459_s19] sm:$0xff] %v1479_v27 }
0x10dd   :  { %v1401_v9 = vpop.f32.mrf.mxu2 }
0x10de   :  { %v1402_v11 = vadd.f32 %v1731_v8, %v1401_v9 }
0x10e0   :  { %1406 = vst.msk [vmem:[#allocation2] sm:$0x3] %vm1405_vm0, %v1402_v11 }
0x10e1   :  { %1493 = dma.vmem_to_hbm [thread:$0]  %s1489_s4, 32, %s1491_s8, [#allocation3]  }
0x10e5   :  { %v1403_v28 = vpop.f32.mrf.mxu2 }
0x10e6   :  { %1850 = dma.done.wait [#allocation3], 32  }
0x10e7   :  { %1851 = vsyncadd [#allocation3], 4294967264 }
0x10e8   :  { %1502 = vsyncpa [#allocation3], 1 }

</bundles_post_ra>
